<compile_context>
chip_gen: v6e
topology: v6e:2x2x1
jax: 0.10.0
libtpu: 0.0.40
codegen_flags: <defaults>
</compile_context>

<pallas_src>
import functools

import numpy as np
import jax
import jax.numpy as jnp
from jax.experimental import pallas as pl
from jax.experimental.pallas import tpu as pltpu  # noqa: F401  (TPU backend)

# ----------------------------- configuration --------------------------------
EMBED_DIM = 32
NUM_HEADS = 4
HEAD_DIM = EMBED_DIM // NUM_HEADS          # 8
PROJ_DIM = 64                              # random-feature projection dim
BATCH = 2
SEQ = 8


# ------------------------------ Pallas kernel -------------------------------
def rfa_fused_kernel(x_ref, wq_ref, wk_ref, wv_ref, wo_ref, b_ref,
                     mseg_ref, wp_ref, mfeat_ref, mv_ref, mb_ref, o_ref, *,
                     num_heads):
    """Whole forward pass for all batches/heads in one invocation.

    x_ref: (B*N, E); w*_ref: (E, E) already transposed (y = x @ W^T);
    b_ref: (4, E) rows = [bq, bk, bv, bo]; mseg: (E, E) same-head indicator;
    wp: (E, H*P) block-diag proj^T * num_heads**-0.25;
    mfeat: (H*B*N, H*P), mv: (H*B*N, E) head-block masks for the replicated
    key/value rows; mb: (B*N, H*B*N) same-batch mask. Output o_ref: (B*N, E).
    """
    f32 = jnp.float32
    eps = 1e-4
    x = x_ref[...].astype(f32)                                   # (BN, E)
    bq, bk, bv, bo = (b_ref[0:1, :], b_ref[1:2, :], b_ref[2:3, :], b_ref[3:4, :])

    # ---- fused input projections (torch Linear: y = x @ W^T + b) ----
    q = jnp.dot(x, wq_ref[...], preferred_element_type=f32) + bq
    k = jnp.dot(x, wk_ref[...], preferred_element_type=f32) + bk
    v = jnp.dot(x, wv_ref[...], preferred_element_type=f32) + bv

    # ---- per-head L2 norm for q and k together (one matmul via mseg) ----
    qk = jnp.concatenate([q, k], axis=0)                         # (2BN, E)
    ss = jnp.dot(qk * qk, mseg_ref[...], preferred_element_type=f32)
    nrm = jnp.sqrt(ss) + eps                                     # matches x/(||x||+eps)
    inv = pl.reciprocal(nrm, approx=True)
    inv = inv * (2.0 - nrm * inv)                                # Newton step (~f32)
    qkn = qk * inv

    # ---- random-feature projection, all heads + q&k in ONE matmul ----
    # (num_heads**-0.25 folded into wp; feature scale P**-0.5 cancels num/den.)
    feat = jnp.dot(qkn, wp_ref[...], preferred_element_type=f32)  # (2BN, H*P)
    sf, cf = jnp.sin(feat), jnp.cos(feat)
    bn = x.shape[0]
    sq, sk = sf[:bn], sf[bn:]
    cq, ck = cf[:bn], cf[bn:]

    # ---- head-batched attention ----
    # Replicate key features / values per head along rows (h-major axis of
    # H*BN rows = cheap sublane-tile copies, no transposes) and mask each
    # replica to its own head's feature / embedding block.
    sk_rep = jnp.concatenate([sk] * num_heads, axis=0) * mfeat_ref[...]
    ck_rep = jnp.concatenate([ck] * num_heads, axis=0) * mfeat_ref[...]
    v_rep = jnp.concatenate([v] * num_heads, axis=0) * mv_ref[...]

    dn_t = (((1,), (1,)), ((), ()))                               # X @ Y^T
    a = jax.lax.dot_general(sq, sk_rep, dn_t, preferred_element_type=f32)
    a = a + jax.lax.dot_general(cq, ck_rep, dn_t, preferred_element_type=f32)
    a = a * mb_ref[...]                                           # kill cross-batch cols

    num = jnp.dot(a, v_rep, preferred_element_type=f32)           # (BN, E) 'b n (h d)'
    den = jnp.dot(a, mv_ref[...], preferred_element_type=f32)     # per-head den, bcast over D
    # TODO(synk): no eps/clamp on den (parity with the reference / module).
    r = pl.reciprocal(den, approx=True)
    r = r * (2.0 - den * r)
    attn = num * r                                                # (BN, E)

    # ---- fused out_proj (dropout p=0.0 -> identity) ----
    y = jnp.dot(attn, wo_ref[...], preferred_element_type=f32) + bo
    o_ref[...] = y.astype(o_ref.dtype)
    # TODO(synk): causal=True and attn_mask paths of linear_product are not
    # implemented (module defaults: causal=False, attn_mask=None).


def rfa_forward(x, params, num_heads):
    """Full RandomFeatureAttention forward: (B, N, E) -> (B, N, E)."""
    B, N, E = x.shape
    BN = B * N
    kernel = functools.partial(rfa_fused_kernel, num_heads=num_heads)
    # Single invocation, whole-array VMEM refs (total footprint ~100 KiB << VMEM
    # on v5e/v6e/v7x). The two reshapes are contiguous metadata-only ops.
    out2d = pl.pallas_call(
        kernel,
        out_shape=jax.ShapeDtypeStruct((BN, E), jnp.float32),
    )(x.reshape(BN, E),
      params["wq_t"], params["wk_t"], params["wv_t"], params["wo_t"],
      params["b4"], params["mseg"], params["wp"],
      params["mfeat"], params["mv"], params["mb"])
    return out2d.reshape(B, N, E)


# ------------------------------ params / init -------------------------------
def orthogonal_random_matrix(key, proj_dim, head_dim):
    """Blockwise-orthogonal random matrix of shape (proj_dim, head_dim)."""
    n_blocks = (proj_dim + head_dim - 1) // head_dim
    rows = []
    for _ in range(n_blocks):
        key, sub = jax.random.split(key)
        g = jax.random.normal(sub, (head_dim, head_dim), jnp.float32)
        qm, _ = jnp.linalg.qr(g)
        rows.append(qm.T)
    return jnp.concatenate(rows, axis=0)[:proj_dim]


def init_params(key, embed_dim, num_heads, proj_dim, head_dim, batch, seq):
    ks = jax.random.split(key, 9)
    bound = 1.0 / (embed_dim ** 0.5)

    def lin(kw, kb):
        w = jax.random.uniform(kw, (embed_dim, embed_dim), jnp.float32, -bound, bound)
        b = jax.random.uniform(kb, (embed_dim,), jnp.float32, -bound, bound)
        return w, b

    wq, bq = lin(ks[0], ks[1])
    wk, bk = lin(ks[2], ks[3])
    wv, bv = lin(ks[4], ks[5])
    wo, bo = lin(ks[6], ks[7])
    proj = orthogonal_random_matrix(ks[8], proj_dim, head_dim)

    # Derived kernel operands (computed ONCE at init):
    hscale = float(num_heads) ** (-0.25)
    eye_h = jnp.eye(num_heads, dtype=jnp.float32)
    wp = jnp.kron(eye_h, proj.T * hscale)                                  # (E, H*P)
    mseg = jnp.kron(eye_h, jnp.ones((head_dim, head_dim), jnp.float32))    # (E, E)

    # Masks for the head-replicated ("h-major") key/value axis of length H*B*N.
    BN = batch * seq
    R = num_heads * BN
    rh = np.arange(R) // BN                         # head id of replicated row
    rb = (np.arange(R) % BN) // seq                 # batch id of replicated row
    mfeat = rh[:, None] == (np.arange(num_heads * proj_dim) // proj_dim)[None, :]
    mv = rh[:, None] == (np.arange(embed_dim) // head_dim)[None, :]
    mb = (np.arange(BN) // seq)[:, None] == rb[None, :]

    return dict(
        wq=wq, bq=bq, wk=wk, bk=bk, wv=wv, bv=bv, wo=wo, bo=bo, proj=proj,
        wq_t=wq.T, wk_t=wk.T, wv_t=wv.T, wo_t=wo.T,
        b4=jnp.stack([bq, bk, bv, bo], axis=0),
        mseg=mseg, wp=wp,
        mfeat=jnp.asarray(mfeat, jnp.float32),
        mv=jnp.asarray(mv, jnp.float32),
        mb=jnp.asarray(mb, jnp.float32),
    )


# ------------------------------ pure-JAX reference --------------------------
def reference_forward(x, params, num_heads):
    B, N, E = x.shape
    H = num_heads
    D = E // H
    P = params["proj"].shape[0]
    q = x @ params["wq"].T + params["bq"]
    k = x @ params["wk"].T + params["bk"]
    v = x @ params["wv"].T + params["bv"]
    to_heads = lambda t: t.reshape(B, N, H, D).transpose(0, 2, 1, 3)
    q, k, v = to_heads(q), to_heads(k), to_heads(v)
    eps = 1e-4
    q = q / (jnp.linalg.norm(q, axis=-1, keepdims=True) + eps)
    k = k / (jnp.linalg.norm(k, axis=-1, keepdims=True) + eps)
    hscale = H ** (-0.25)
    qp = jnp.einsum("bhnd,pd->bhnp", q, params["proj"]) * hscale
    kp = jnp.einsum("bhnd,pd->bhnp", k, params["proj"]) * hscale
    fscale = P ** (-0.5)
    qf = jnp.concatenate([jnp.sin(qp), jnp.cos(qp)], axis=-1) * fscale
    kf = jnp.concatenate([jnp.sin(kp), jnp.cos(kp)], axis=-1) * fscale
    kv = jnp.einsum("bhmp,bhmd->bhpd", kf, v)
    den = jnp.einsum("bhnp,bhp->bhn", qf, jnp.sum(kf, axis=2))
    out = jnp.einsum("bhnp,bhpd->bhnd", qf, kv) / den[..., None]
    out = out.transpose(0, 2, 1, 3).reshape(B, N, E)
    return out @ params["wo"].T + params["bo"]


# ----------------------------------- main ------------------------------------
if __name__ == "__main__":
    key = jax.random.PRNGKey(0)
    k_x, k_p = jax.random.split(key)
    x = jax.random.normal(k_x, (BATCH, SEQ, EMBED_DIM), jnp.float32)
    params = init_params(k_p, EMBED_DIM, NUM_HEADS, PROJ_DIM, HEAD_DIM, BATCH, SEQ)

    out = rfa_forward(x, params, NUM_HEADS)
    out = jax.block_until_ready(out)

    ref = reference_forward(x, params, NUM_HEADS)
    assert out.shape == (BATCH, SEQ, EMBED_DIM)
    # Tolerance covers the EUP approx-reciprocals (+Newton) and the dropped
    # (cancelling) feature scale; observed error is far below this.
    assert jnp.allclose(out, ref, atol=1e-3, rtol=1e-3), float(jnp.abs(out - ref).max())
    print("KERNEL_OK")
</pallas_src>

<mosaic_0001>
module attributes {stable_mosaic.version = 11 : i64} {
  func.func @rfa_fused_kernel(%arg0: memref<16x32xf32, #tpu.memory_space<vmem>>, %arg1: memref<32x32xf32, #tpu.memory_space<vmem>>, %arg2: memref<32x32xf32, #tpu.memory_space<vmem>>, %arg3: memref<32x32xf32, #tpu.memory_space<vmem>>, %arg4: memref<32x32xf32, #tpu.memory_space<vmem>>, %arg5: memref<4x32xf32, #tpu.memory_space<vmem>>, %arg6: memref<32x32xf32, #tpu.memory_space<vmem>>, %arg7: memref<32x256xf32, #tpu.memory_space<vmem>>, %arg8: memref<64x256xf32, #tpu.memory_space<vmem>>, %arg9: memref<64x32xf32, #tpu.memory_space<vmem>>, %arg10: memref<16x64xf32, #tpu.memory_space<vmem>>, %arg11: memref<16x32xf32, #tpu.memory_space<vmem>>) attributes {dimension_semantics = [], scalar_prefetch = 0 : i64, scratch_operands = 0 : i64, tpu.core_type = #tpu.core_type<tc>} {
    %c0 = arith.constant 0 : index
    %c0_0 = arith.constant 0 : index
    %0 = vector.load %arg0[%c0, %c0_0] : memref<16x32xf32, #tpu.memory_space<vmem>>, vector<16x32xf32>
    %c0_1 = arith.constant 0 : index
    %c0_2 = arith.constant 0 : index
    %1 = vector.load %arg5[%c0_1, %c0_2] : memref<4x32xf32, #tpu.memory_space<vmem>>, vector<1x32xf32>
    %c1 = arith.constant 1 : index
    %c0_3 = arith.constant 0 : index
    %2 = vector.load %arg5[%c1, %c0_3] : memref<4x32xf32, #tpu.memory_space<vmem>>, vector<1x32xf32>
    %c2 = arith.constant 2 : index
    %c0_4 = arith.constant 0 : index
    %3 = vector.load %arg5[%c2, %c0_4] : memref<4x32xf32, #tpu.memory_space<vmem>>, vector<1x32xf32>
    %c3 = arith.constant 3 : index
    %c0_5 = arith.constant 0 : index
    %4 = vector.load %arg5[%c3, %c0_5] : memref<4x32xf32, #tpu.memory_space<vmem>>, vector<1x32xf32>
    %c0_6 = arith.constant 0 : index
    %c0_7 = arith.constant 0 : index
    %5 = vector.load %arg1[%c0_6, %c0_7] : memref<32x32xf32, #tpu.memory_space<vmem>>, vector<32x32xf32>
    %cst = arith.constant dense<0.000000e+00> : vector<16x32xf32>
    %6 = tpu.matmul %0, %5, %cst {dimension_numbers = #tpu.dot_dimension_numbers<[1], [0], [0], [1], [0, 0, 1, 1], [], []>} : vector<16x32xf32>, vector<32x32xf32>, vector<16x32xf32> -> vector<16x32xf32>
    %7 = vector.broadcast %1 : vector<1x32xf32> to vector<16x32xf32>
    %8 = arith.addf %6, %7 : vector<16x32xf32>
    %c0_8 = arith.constant 0 : index
    %c0_9 = arith.constant 0 : index
    %9 = vector.load %arg2[%c0_8, %c0_9] : memref<32x32xf32, #tpu.memory_space<vmem>>, vector<32x32xf32>
    %cst_10 = arith.constant dense<0.000000e+00> : vector<16x32xf32>
    %10 = tpu.matmul %0, %9, %cst_10 {dimension_numbers = #tpu.dot_dimension_numbers<[1], [0], [0], [1], [0, 0, 1, 1], [], []>} : vector<16x32xf32>, vector<32x32xf32>, vector<16x32xf32> -> vector<16x32xf32>
    %11 = vector.broadcast %2 : vector<1x32xf32> to vector<16x32xf32>
    %12 = arith.addf %10, %11 : vector<16x32xf32>
    %c0_11 = arith.constant 0 : index
    %c0_12 = arith.constant 0 : index
    %13 = vector.load %arg3[%c0_11, %c0_12] : memref<32x32xf32, #tpu.memory_space<vmem>>, vector<32x32xf32>
    %cst_13 = arith.constant dense<0.000000e+00> : vector<16x32xf32>
    %14 = tpu.matmul %0, %13, %cst_13 {dimension_numbers = #tpu.dot_dimension_numbers<[1], [0], [0], [1], [0, 0, 1, 1], [], []>} : vector<16x32xf32>, vector<32x32xf32>, vector<16x32xf32> -> vector<16x32xf32>
    %15 = vector.broadcast %3 : vector<1x32xf32> to vector<16x32xf32>
    %16 = arith.addf %14, %15 : vector<16x32xf32>
    %17 = tpu.concatenate %8, %12 in 0 : vector<16x32xf32>, vector<16x32xf32> -> vector<32x32xf32>
    %18 = arith.mulf %17, %17 : vector<32x32xf32>
    %c0_14 = arith.constant 0 : index
    %c0_15 = arith.constant 0 : index
    %19 = vector.load %arg6[%c0_14, %c0_15] : memref<32x32xf32, #tpu.memory_space<vmem>>, vector<32x32xf32>
    %cst_16 = arith.constant dense<0.000000e+00> : vector<32x32xf32>
    %20 = tpu.matmul %18, %19, %cst_16 {dimension_numbers = #tpu.dot_dimension_numbers<[1], [0], [0], [1], [0, 0, 1, 1], [], []>} : vector<32x32xf32>, vector<32x32xf32>, vector<32x32xf32> -> vector<32x32xf32>
    %21 = math.sqrt %20 : vector<32x32xf32>
    %cst_17 = arith.constant 9.99999974E-5 : f32
    %22 = vector.broadcast %cst_17 : f32 to vector<32x32xf32>
    %23 = arith.addf %21, %22 : vector<32x32xf32>
    %24 = tpu.reciprocal %23 {approx = true} : vector<32x32xf32> -> vector<32x32xf32>
    %25 = arith.mulf %23, %24 : vector<32x32xf32>
    %cst_18 = arith.constant 2.000000e+00 : f32
    %26 = vector.broadcast %cst_18 : f32 to vector<32x32xf32>
    %27 = arith.subf %26, %25 : vector<32x32xf32>
    %28 = arith.mulf %24, %27 : vector<32x32xf32>
    %29 = arith.mulf %17, %28 : vector<32x32xf32>
    %c0_19 = arith.constant 0 : index
    %c0_20 = arith.constant 0 : index
    %30 = vector.load %arg7[%c0_19, %c0_20] : memref<32x256xf32, #tpu.memory_space<vmem>>, vector<32x256xf32>
    %cst_21 = arith.constant dense<0.000000e+00> : vector<32x256xf32>
    %31 = tpu.matmul %29, %30, %cst_21 {dimension_numbers = #tpu.dot_dimension_numbers<[1], [0], [0], [1], [0, 0, 1, 1], [], []>} : vector<32x32xf32>, vector<32x256xf32>, vector<32x256xf32> -> vector<32x256xf32>
    %32 = math.sin %31 : vector<32x256xf32>
    %33 = math.cos %31 : vector<32x256xf32>
    %34 = vector.extract_strided_slice %32 {offsets = [0, 0], sizes = [16, 256], strides = [1, 1]} : vector<32x256xf32> to vector<16x256xf32>
    %35 = vector.extract_strided_slice %32 {offsets = [16, 0], sizes = [16, 256], strides = [1, 1]} : vector<32x256xf32> to vector<16x256xf32>
    %36 = vector.extract_strided_slice %33 {offsets = [0, 0], sizes = [16, 256], strides = [1, 1]} : vector<32x256xf32> to vector<16x256xf32>
    %37 = vector.extract_strided_slice %33 {offsets = [16, 0], sizes = [16, 256], strides = [1, 1]} : vector<32x256xf32> to vector<16x256xf32>
    %38 = tpu.concatenate %35, %35, %35, %35 in 0 : vector<16x256xf32>, vector<16x256xf32>, vector<16x256xf32>, vector<16x256xf32> -> vector<64x256xf32>
    %c0_22 = arith.constant 0 : index
    %c0_23 = arith.constant 0 : index
    %39 = vector.load %arg8[%c0_22, %c0_23] : memref<64x256xf32, #tpu.memory_space<vmem>>, vector<64x256xf32>
    %40 = arith.mulf %38, %39 : vector<64x256xf32>
    %41 = tpu.concatenate %37, %37, %37, %37 in 0 : vector<16x256xf32>, vector<16x256xf32>, vector<16x256xf32>, vector<16x256xf32> -> vector<64x256xf32>
    %c0_24 = arith.constant 0 : index
    %c0_25 = arith.constant 0 : index
    %42 = vector.load %arg8[%c0_24, %c0_25] : memref<64x256xf32, #tpu.memory_space<vmem>>, vector<64x256xf32>
    %43 = arith.mulf %41, %42 : vector<64x256xf32>
    %44 = tpu.concatenate %16, %16, %16, %16 in 0 : vector<16x32xf32>, vector<16x32xf32>, vector<16x32xf32>, vector<16x32xf32> -> vector<64x32xf32>
    %c0_26 = arith.constant 0 : index
    %c0_27 = arith.constant 0 : index
    %45 = vector.load %arg9[%c0_26, %c0_27] : memref<64x32xf32, #tpu.memory_space<vmem>>, vector<64x32xf32>
    %46 = arith.mulf %44, %45 : vector<64x32xf32>
    %cst_28 = arith.constant dense<0.000000e+00> : vector<16x64xf32>
    %47 = tpu.matmul %34, %40, %cst_28 {dimension_numbers = #tpu.dot_dimension_numbers<[1], [1], [0], [0], [0, 0, 1, 0], [], []>} : vector<16x256xf32>, vector<64x256xf32>, vector<16x64xf32> -> vector<16x64xf32>
    %cst_29 = arith.constant dense<0.000000e+00> : vector<16x64xf32>
    %48 = tpu.matmul %36, %43, %cst_29 {dimension_numbers = #tpu.dot_dimension_numbers<[1], [1], [0], [0], [0, 0, 1, 0], [], []>} : vector<16x256xf32>, vector<64x256xf32>, vector<16x64xf32> -> vector<16x64xf32>
    %49 = arith.addf %47, %48 : vector<16x64xf32>
    %c0_30 = arith.constant 0 : index
    %c0_31 = arith.constant 0 : index
    %50 = vector.load %arg10[%c0_30, %c0_31] : memref<16x64xf32, #tpu.memory_space<vmem>>, vector<16x64xf32>
    %51 = arith.mulf %49, %50 : vector<16x64xf32>
    %cst_32 = arith.constant dense<0.000000e+00> : vector<16x32xf32>
    %52 = tpu.matmul %51, %46, %cst_32 {dimension_numbers = #tpu.dot_dimension_numbers<[1], [0], [0], [1], [0, 0, 1, 1], [], []>} : vector<16x64xf32>, vector<64x32xf32>, vector<16x32xf32> -> vector<16x32xf32>
    %c0_33 = arith.constant 0 : index
    %c0_34 = arith.constant 0 : index
    %53 = vector.load %arg9[%c0_33, %c0_34] : memref<64x32xf32, #tpu.memory_space<vmem>>, vector<64x32xf32>
    %cst_35 = arith.constant dense<0.000000e+00> : vector<16x32xf32>
    %54 = tpu.matmul %51, %53, %cst_35 {dimension_numbers = #tpu.dot_dimension_numbers<[1], [0], [0], [1], [0, 0, 1, 1], [], []>} : vector<16x64xf32>, vector<64x32xf32>, vector<16x32xf32> -> vector<16x32xf32>
    %55 = tpu.reciprocal %54 {approx = true} : vector<16x32xf32> -> vector<16x32xf32>
    %56 = arith.mulf %54, %55 : vector<16x32xf32>
    %cst_36 = arith.constant 2.000000e+00 : f32
    %57 = vector.broadcast %cst_36 : f32 to vector<16x32xf32>
    %58 = arith.subf %57, %56 : vector<16x32xf32>
    %59 = arith.mulf %55, %58 : vector<16x32xf32>
    %60 = arith.mulf %52, %59 : vector<16x32xf32>
    %c0_37 = arith.constant 0 : index
    %c0_38 = arith.constant 0 : index
    %61 = vector.load %arg4[%c0_37, %c0_38] : memref<32x32xf32, #tpu.memory_space<vmem>>, vector<32x32xf32>
    %cst_39 = arith.constant dense<0.000000e+00> : vector<16x32xf32>
    %62 = tpu.matmul %60, %61, %cst_39 {dimension_numbers = #tpu.dot_dimension_numbers<[1], [0], [0], [1], [0, 0, 1, 1], [], []>} : vector<16x32xf32>, vector<32x32xf32>, vector<16x32xf32> -> vector<16x32xf32>
    %63 = vector.broadcast %4 : vector<1x32xf32> to vector<16x32xf32>
    %64 = arith.addf %62, %63 : vector<16x32xf32>
    %c0_40 = arith.constant 0 : index
    %c0_41 = arith.constant 0 : index
    %65 = vector.load %arg11[%c0_40, %c0_41] : memref<16x32xf32, #tpu.memory_space<vmem>>, vector<16x32xf32>
    tpu.vector_store %arg11[%c0_40, %c0_41], %64 {strides = array<i32>} : memref<16x32xf32, #tpu.memory_space<vmem>>, vector<16x32xf32>,
    return
  }
}

</mosaic_0001>

<bundles_post_ra>
// kernel: tpu_custom_call.1
= control target key start
LH: loop header
LB: loop body
LE: loop exit
PB: predicated region body
PF: predicated region fallthrough
CT: control target
= control target key end

     0   :  { %16 = vsyncpa [#allocation3], 0  ;;  %s4412_s0 = inlined_call_operand.hbm [shape: f32[16,32], index: 0, kind: input, shape index: {}]   ;;  %s4413_s1 = inlined_call_operand.vmem [shape: f32[32,32], index: 1, kind: input, shape index: {}]   ;;  %s4414_s2 = inlined_call_operand.hbm [shape: f32[32,32], index: 2, kind: input, shape index: {}]   ;;  %s4415_s3 = inlined_call_operand.hbm [shape: f32[32,32], index: 3, kind: input, shape index: {}]   ;;  %s4416_s4 = inlined_call_operand.hbm [shape: f32[32,32], index: 4, kind: input, shape index: {}]   ;;  %s4417_s5 = inlined_call_operand.hbm [shape: f32[4,32], index: 5, kind: input, shape index: {}]   ;;  %s4418_s6 = inlined_call_operand.hbm [shape: f32[32,32], index: 6, kind: input, shape index: {}]   ;;  %s4419_s7 = inlined_call_operand.vmem [shape: f32[32,256], index: 7, kind: input, shape index: {}]   ;;  %s4420_s8 = inlined_call_operand.hbm [shape: f32[64,256], index: 8, kind: input, shape index: {}]   ;;  %s4421_s9 = inlined_call_operand.vmem [shape: f32[64,32], index: 9, kind: input, shape index: {}]   ;;  %s4422_s10 = inlined_call_operand.vmem [shape: f32[16,64], index: 10, kind: input, shape index: {}]   ;;  %s4423_s11 = inlined_call_operand.hbm [shape: f32[16,32], index: 11, kind: output, shape index: {}]  }
   0x1   :  { %17 = vsyncpa [#allocation6], 0 }
   0x2   :  { %18 = vsyncpa [#allocation9], 0 }
   0x3   :  { %19 = vsyncpa [#allocation12], 0 }
   0x4   :  { %20 = vsyncpa [#allocation4], 0  ;;  %s3321_s17 = smov [#allocation5]   ;;  %s3322_s19 = smov [#allocation8]  }
   0x5   :  { %s40_s18 = sshll.u32 %s3321_s17, 4  ;;  %s64_s20 = sshll.u32 %s3322_s19, 4  ;;  %s41_s18 = int_to_ptr.vmem [resolvable:$true] %s40_s18  ;;  %s65_s20 = int_to_ptr.vmem [resolvable:$true] %s64_s20 }
   0x6   :  { %s3159_s21 = scalar_lea.vmem %s41_s18, 512  ;;  %p3164_p1 = scmp.lt.s32.totalorder %s41_s18, %s41_s18 }
   0x7   :  { %p3160_p0 = scmp.ne.s32.totalorder %s41_s18, %s3159_s21  ;;  %p3165_p2 = scmp.lt.s32.totalorder %s3159_s21, %s3159_s21 }
   0x9   :  { %p3166_p3 = por %p3165_p2, %p3164_p1 }
   0xb   :  { %p3167_p4 = pnand %p3166_p3, %p3160_p0 }
   0xd   :  { %3170 = shalt.err (!%p3167_p4)
}
   0xe   :  { %s3323_s22 = smov 128   ;;  %s3324_s23 = smov 8  }
   0xf   :  { %46 = dma.hbm_to_vmem [thread:$0]  %s4414_s2, 512, %s41_s18, [#allocation6], %s3323_s22, %s3323_s22, %s3324_s23  }
  0x10   :  { %s3179_s26 = scalar_lea.vmem %s65_s20, 512  ;;  %p3184_p6 = scmp.lt.s32.totalorder %s65_s20, %s65_s20 }
  0x11   :  { %p3180_p5 = scmp.ne.s32.totalorder %s65_s20, %s3179_s26  ;;  %p3185_p7 = scmp.lt.s32.totalorder %s3179_s26, %s3179_s26 }
  0x13   :  { %p3186_p8 = por %p3185_p7, %p3184_p6 }
  0x15   :  { %p3187_p9 = pnand %p3186_p8, %p3180_p5 }
  0x17   :  { %3190 = shalt.err (!%p3187_p9)
}
  0x18   :  { %70 = dma.hbm_to_vmem [thread:$0]  %s4416_s4, 512, %s65_s20, [#allocation9], %s3323_s22, %s3323_s22, %s3324_s23  }
  0x19   :  { %s3325_s29 = smov [#allocation11]   ;;  %s3326_s12 = smov [#allocation2]  }
  0x1a   :  { %s86_s30 = sshll.u32 %s3325_s29, 4  ;;  %s26_s13 = sshll.u32 %s3326_s12, 4  ;;  %s87_s30 = int_to_ptr.vmem [resolvable:$true] %s86_s30  ;;  %s27_s13 = int_to_ptr.vmem [resolvable:$true] %s26_s13 }
  0x1b   :  { %s3199_s2 = scalar_lea.vmem %s87_s30, 512  ;;  %p3204_p11 = scmp.lt.s32.totalorder %s87_s30, %s87_s30 }
  0x1c   :  { %p3200_p10 = scmp.ne.s32.totalorder %s87_s30, %s3199_s2  ;;  %p3205_p12 = scmp.lt.s32.totalorder %s3199_s2, %s3199_s2 }
  0x1e   :  { %p3206_p13 = por %p3205_p12, %p3204_p11 }
  0x20   :  { %p3207_p0 = pnand %p3206_p13, %p3200_p10 }
  0x22   :  { %3210 = shalt.err (!%p3207_p0)
}
  0x23   :  { %92 = dma.hbm_to_vmem [thread:$0]  %s4418_s6, 512, %s87_s30, [#allocation12], %s3323_s22, %s3323_s22, %s3324_s23  }
  0x24   :  { %s3219_s4 = scalar_lea.vmem %s27_s13, 256  ;;  %p3224_p2 = scmp.lt.s32.totalorder %s27_s13, %s27_s13 }
  0x25   :  { %p3220_p1 = scmp.ne.s32.totalorder %s27_s13, %s3219_s4  ;;  %p3225_p3 = scmp.lt.s32.totalorder %s3219_s4, %s3219_s4 }
  0x27   :  { %p3226_p4 = por %p3225_p3, %p3224_p2 }
  0x29   :  { %p3227_p5 = pnand %p3226_p4, %p3220_p1 }
  0x2b   :  { %3230 = shalt.err (!%p3227_p5)
}
  0x2c   :  { %32 = dma.hbm_to_vmem [thread:$0]  %s4412_s0, 256, %s27_s13, [#allocation3], %s3323_s22, %s3323_s22, %s3324_s23  }
  0x2d   :  { %s3327_s18 = smov [#allocation7]   ;;  %s3328_s20 = smov [#allocation10]  }
  0x2e   :  { %s52_s19 = sshll.u32 %s3327_s18, 4  ;;  %s77_s21 = sshll.u32 %s3328_s20, 4  ;;  %s53_s19 = int_to_ptr.vmem [resolvable:$true] %s52_s19  ;;  %s78_s21 = int_to_ptr.vmem [resolvable:$true] %s77_s21 }
  0x2f   :  { %s3239_s6 = scalar_lea.vmem %s53_s19, 512  ;;  %p3244_p7 = scmp.lt.s32.totalorder %s53_s19, %s53_s19 }
  0x30   :  { %p3240_p6 = scmp.ne.s32.totalorder %s53_s19, %s3239_s6  ;;  %p3245_p8 = scmp.lt.s32.totalorder %s3239_s6, %s3239_s6 }
  0x32   :  { %p3246_p9 = por %p3245_p8, %p3244_p7 }
  0x34   :  { %p3247_p10 = pnand %p3246_p9, %p3240_p6 }
  0x36   :  { %3250 = shalt.err (!%p3247_p10)
}
  0x37   :  { %58 = dma.hbm_to_vmem [thread:$0]  %s4415_s3, 512, %s53_s19, [#allocation6], %s3323_s22, %s3323_s22, %s3324_s23  }
  0x38   :  { %s3259_s0 = scalar_lea.vmem %s78_s21, 64  ;;  %p3264_p12 = scmp.lt.s32.totalorder %s78_s21, %s78_s21 }
  0x39   :  { %p3260_p11 = scmp.ne.s32.totalorder %s78_s21, %s3259_s0  ;;  %p3265_p13 = scmp.lt.s32.totalorder %s3259_s0, %s3259_s0 }
  0x3b   :  { %p3266_p0 = por %p3265_p13, %p3264_p12 }
  0x3d   :  { %p3267_p1 = pnand %p3266_p0, %p3260_p11 }
  0x3f   :  { %3270 = shalt.err (!%p3267_p1)
}
  0x40   :  { %80 = dma.hbm_to_vmem [thread:$0]  %s4417_s5, 64, %s78_s21, [#allocation9]  }
  0x41   :  { %s3329_s28 = smov [#allocation13]  }
  0x42   :  { %s100_s29 = sshll.u32 %s3329_s28, 4  ;;  %s101_s29 = int_to_ptr.vmem [resolvable:$true] %s100_s29 }
  0x43   :  { %s3279_s30 = scalar_lea.vmem %s101_s29, 2048  ;;  %p3284_p3 = scmp.lt.s32.totalorder %s101_s29, %s101_s29 }
  0x44   :  { %p3280_p2 = scmp.ne.s32.totalorder %s101_s29, %s3279_s30  ;;  %p3285_p4 = scmp.lt.s32.totalorder %s3279_s30, %s3279_s30 }
  0x46   :  { %p3286_p5 = por %p3285_p4, %p3284_p3 }
  0x48   :  { %p3287_p6 = pnand %p3286_p5, %p3280_p2 }
  0x4a   :  { %3290 = shalt.err (!%p3287_p6)
}
  0x4b   :  { %s3330_s3 = smov 256   ;;  %s3331_s12 = smov 16  }
  0x4c   :  { %106 = dma.hbm_to_vmem [thread:$0]  %s4420_s8, 2048, %s101_s29, [#allocation12], %s3330_s3, %s3330_s3, %s3331_s12  }
  0x4d   :  { %3311 = dma.done.wait [#allocation3], 256  }
  0x4e   :  { %3312 = vsyncadd [#allocation3], 4294967040 }
  0x4f   :  { %3313 = dma.done.wait [#allocation6], 1024  }
  0x50   :  { %3314 = vsyncadd [#allocation6], 4294966272 }
  0x51   :  { %3315 = dma.done.wait [#allocation9], 576  }
  0x52   :  { %3316 = vsyncadd [#allocation9], 4294966720 }
  0x53   :  { %3317 = dma.done.wait [#allocation12], 2560  }
  0x54   :  { %3318 = vsyncadd [#allocation12], 4294964736  ;;  %v141_v0 = vld [vmem:[%s4413_s1 + $0x18] sm:$0xff]  ;;  %v140_v1 = vld [vmem:[%s4413_s1 + $0x10] sm:$0xff]  ;;  %vm4455_vm0 = vcmask 261120   ;;  %v3332_v37 = vmov 0.0  }
  0x55   :  { %2952 = vmatprep.subr.mxu0 %v141_v0  ;;  %v231_v2 = vld [vmem:[#allocation5 + $0x18] sm:$0xff]  ;;  %v230_v3 = vld [vmem:[#allocation5 + $0x10] sm:$0xff]  ;;  %v229_v7 = vld [vmem:[#allocation5 + $0x8] sm:$0xff] }
  0x56   :  { %2953 = vmatpush3.msra.mxu0 %v141_v0  ;;  %v139_v4 = vld [vmem:[%s4413_s1 + $0x8] sm:$0xff]  ;;  %2963 = vmatprep.subr.mxu1 %v231_v2  ;;  %v132_v5 = vld [vmem:[#allocation2] sm:$0xff]  ;;  %v228_v9 = vld [vmem:[#allocation5] sm:$0xff] }
  0x57   :  { %2954 = vmatprep.subr.mxu0 %v140_v1  ;;  %2964 = vmatpush3.msra.mxu1 %v231_v2  ;;  %v138_v6 = vld [vmem:[%s4413_s1] sm:$0xff]  ;;  %v133_v8 = vld [vmem:[#allocation2 + $0x8] sm:$0xff]  ;;  %v398_v13 = vld [vmem:[#allocation11] sm:$0xff] }
  0x58   :  { %2955 = vmatpush3.msra.mxu0 %v140_v1  ;;  %2965 = vmatprep.subr.mxu1 %v230_v3  ;;  %v401_v10 = vld [vmem:[#allocation11 + $0x18] sm:$0xff]  ;;  %v400_v11 = vld [vmem:[#allocation11 + $0x10] sm:$0xff]  ;;  %v399_v12 = vld [vmem:[#allocation11 + $0x8] sm:$0xff] }
  0x59   :  { %2956 = vmatprep.subr.mxu0 %v139_v4  ;;  %2960 = vmatprep.mubr.msk.f32.mxu0 %vm4455_vm0, %v132_v5  ;;  %v2812_v14 = vld [vmem:[#allocation10] ss:$0 sm:$0xff]  ;;  %v2815_v16 = vld [vmem:[#allocation10 + $0x1] ss:$0 sm:$0xff]  ;;  %v314_v28 = vld [vmem:[#allocation7 + $0x18] sm:$0xff] }
  0x5a   :  { %2957 = vmatpush3.msra.mxu0 %v139_v4  ;;  %2966 = vmatpush3.msra.mxu1 %v230_v3  ;;  %v313_v29 = vld [vmem:[#allocation7 + $0x10] sm:$0xff]  ;;  %v312_v30 = vld [vmem:[#allocation7 + $0x8] sm:$0xff]  ;;  %v311_v31 = vld [vmem:[#allocation7] sm:$0xff] }
  0x5b   :  { %2958 = vmatprep.subr.mxu0 %v138_v6  ;;  %2967 = vmatprep.subr.mxu1 %v229_v7  ;;  %v558_v32 = vld [vmem:[%s4419_s7 + $0x38] sm:$0xff]  ;;  %v557_v33 = vld [vmem:[%s4419_s7 + $0x30] sm:$0xff]  ;;  %v556_v34 = vld [vmem:[%s4419_s7 + $0x28] sm:$0xff] }
  0x5c   :  { %2959 = vmatpush3.msra.mxu0 %v138_v6  ;;  %2968 = vmatpush3.msra.mxu1 %v229_v7  ;;  %v555_v35 = vld [vmem:[%s4419_s7 + $0x20] sm:$0xff]  ;;  %v554_v36 = vld [vmem:[%s4419_s7 + $0x18] sm:$0xff]  ;;  %v553_v38 = vld [vmem:[%s4419_s7 + $0x10] sm:$0xff] }
  0x5d   :  { %2961 = vmatmul.mubr.msk.f32.vlgmr.msra.gmra.mxu0 %vm4455_vm0, %v133_v8  ;;  %2969 = vmatprep.subr.mxu1 %v228_v9  ;;  %v552_v39 = vld [vmem:[%s4419_s7 + $0x8] sm:$0xff]  ;;  %v551_v40 = vld [vmem:[%s4419_s7] sm:$0xff] }
  0x5e   :  { %2970 = vmatpush3.msra.mxu1 %v228_v9  ;;  %2971 = vmatprep.mubr.msk.f32.mxu1 %vm4455_vm0, %v132_v5 }
  0x5f   :  { %2972 = vmatmul.mubr.msk.f32.vlgmr.msra.gmra.mxu1 %vm4455_vm0, %v133_v8  ;;  %2982 = vmatprep.mubr.msk.f32.mxu0 %vm4455_vm0, %v132_v5 }
  0x60   :  { %2985 = vmatprep.subr.mxu1 %v401_v10  ;;  %2974 = vmatprep.subr.mxu0 %v314_v28 }
  0x61   :  { %2986 = vmatpush3.msra.mxu1 %v401_v10  ;;  %2975 = vmatpush3.msra.mxu0 %v314_v28 }
  0x62   :  { %2987 = vmatprep.subr.mxu1 %v400_v11  ;;  %2976 = vmatprep.subr.mxu0 %v313_v29 }
  0x63   :  { %2988 = vmatpush3.msra.mxu1 %v400_v11  ;;  %2977 = vmatpush3.msra.mxu0 %v313_v29 }
  0x64   :  { %2989 = vmatprep.subr.mxu1 %v399_v12  ;;  %2978 = vmatprep.subr.mxu0 %v312_v30 }
  0x65   :  { %2990 = vmatpush3.msra.mxu1 %v399_v12  ;;  %2979 = vmatpush3.msra.mxu0 %v312_v30 }
  0x66   :  { %2991 = vmatprep.subr.mxu1 %v398_v13  ;;  %2980 = vmatprep.subr.mxu0 %v311_v31 }
  0x67   :  { %2992 = vmatpush3.msra.mxu1 %v398_v13  ;;  %2981 = vmatpush3.msra.mxu0 %v311_v31 }
  0x68   :  { %2983 = vmatmul.mubr.msk.f32.vlgmr.msra.gmra.mxu0 %vm4455_vm0, %v133_v8  ;;  %595 = vmatprep.subr.mxu0 %v558_v32 }
  0x69   :  { %596 = vmatpush1.msra.mxu0 %v557_v33  ;;  %635 = vmatprep.mubr.f32.mxu0 %v3332_v37 }
  0x6a   :  { %597 = vmatprep.subr.mxu0 %v556_v34 }
  0x6b   :  { %598 = vmatpush1.msra.mxu0 %v555_v35 }
  0x6c   :  { %599 = vmatprep.subr.mxu0 %v554_v36 }
  0x6d   :  { %600 = vmatpush1.msra.mxu0 %v553_v38 }
  0x6e   :  { %601 = vmatprep.subr.mxu0 %v552_v39 }
  0x6f   :  { %602 = vmatpush1.msra.mxu0 %v551_v40 }
 0x11d   :  { %v2962_v15 = vpop.f32.mrf.mxu0 }
 0x11e   :  { %v3453_v17 = vadd.f32 %v2962_v15, %v2812_v14 }
 0x11f   :  { %v219_v18 = vpop.f32.mrf.mxu0  ;;  %v2973_v19 = vpop.f32.mrf.mxu1 }
 0x120   :  { %v3455_v20 = vadd.f32 %v2812_v14, %v219_v18  ;;  %v3457_v21 = vadd.f32 %v2973_v19, %v2815_v16  ;;  %v395_v25 = vmul.f32 %v3453_v17, %v3453_v17 }
 0x121   :  { %v302_v22 = vpop.f32.mrf.mxu1 }
 0x122   :  { %v394_v23 = vmul.f32 %v3455_v20, %v3455_v20  ;;  %v3461_v24 = vadd.f32 %v2815_v16, %v302_v22  ;;  %v397_v27 = vmul.f32 %v3457_v21, %v3457_v21 }
 0x124   :  { %v396_v26 = vmul.f32 %v3461_v24, %v3461_v24  ;;  %2993 = vmatprep.mubr.msk.f32.mxu1 %vm4455_vm0, %v394_v23 }
 0x125   :  { %2994 = vmatmul.mubr.msk.f32.vlgmr.msra.gmra.mxu1 %vm4455_vm0, %v395_v25 }
 0x126   :  { %2996 = vmatprep.mubr.msk.f32.mxu1 %vm4455_vm0, %v396_v26 }
 0x128   :  { %v3510_v28 = vpop.f32.mrf.mxu0 }
 0x129   :  { %2997 = vmatmul.mubr.msk.f32.gmra.mxu1 %vm4455_vm0, %v397_v27  ;;  %4458 = vst [vmem:[#allocation20_spill] sm:$0xff] %v3510_v28 }
 0x1e5   :  { %v2995_v41 = vpop.f32.mrf.mxu1 }
 0x1e6   :  { %3099 = vrsqrt.f32 %v2995_v41  ;;  %vm508_vm1 = vcmp.eq.f32.partialorder %v2995_v41, inf  ;;  %v511_v48 = vand.u32 2147483648, %v2995_v41  ;;  %vm510_vm2 = vcmp.eq.f32.partialorder %v2995_v41, 0.0 }
 0x1e7   :  { %v480_v42 = vpop.f32.mrf.mxu1 }
 0x1e8   :  { %3101 = vrsqrt.f32 %v480_v42  ;;  %vm501_vm3 = vcmp.eq.f32.partialorder %v480_v42, inf  ;;  %v504_v53 = vand.u32 2147483648, %v480_v42  ;;  %vm503_vm4 = vcmp.eq.f32.partialorder %v480_v42, 0.0 }
 0x1e9   :  { %v2998_v43 = vpop.f32.mrf.mxu1 }
 0x1ea   :  { %3103 = vrsqrt.f32 %v2998_v43  ;;  %vm522_vm5 = vcmp.eq.f32.partialorder %v2998_v43, inf  ;;  %vm524_vm6 = vcmp.eq.f32.partialorder %v2998_v43, 0.0  ;;  %v525_v59 = vand.u32 2147483648, %v2998_v43 }
 0x1eb   :  { %v490_v44 = vpop.f32.mrf.mxu1 }
 0x1ec   :  { %3105 = vrsqrt.f32 %v490_v44  ;;  %vm515_vm7 = vcmp.eq.f32.partialorder %v490_v44, inf  ;;  %v518_v0 = vand.u32 2147483648, %v490_v44  ;;  %vm517_vm8 = vcmp.eq.f32.partialorder %v490_v44, 0.0 }
 0x1f3   :  { %v3100_v45 = vpop.eup %3099 }
 0x1f4   :  { %v507_v46 = vmul.f32 %v3100_v45, %v2995_v41 }
 0x1f5   :  { %v3102_v47 = vpop.eup %3101 }
 0x1f6   :  { %v509_v49 = vsel %vm508_vm1, %v2995_v41, %v507_v46  ;;  %v500_v50 = vmul.f32 %v3102_v47, %v480_v42  ;;  %v4437_v47 = vmov 683565275  }
 0x1f7   :  { %v3104_v51 = vpop.eup %3103  ;;  %v512_v52 = vsel %vm510_vm2, %v511_v48, %v509_v49  ;;  %v4439_v49 = vmov 2475754826  }
 0x1f8   :  { %v502_v54 = vsel %vm501_vm3, %v480_v42, %v500_v50  ;;  %v521_v55 = vmul.f32 %v3104_v51, %v2998_v43  ;;  %v528_v56 = vadd.f32 0.0001, %v512_v52  ;;  %v4430_v52 = vmov 2131351028  }
 0x1f9   :  { %v3106_v57 = vpop.eup %3105  ;;  %v505_v58 = vsel %vm503_vm4, %v504_v53, %v502_v54 }
 0x1fa   :  { %v527_v60 = vadd.f32 0.0001, %v505_v58  ;;  %v523_v61 = vsel %vm522_vm5, %v2998_v43, %v521_v55  ;;  %v514_v62 = vmul.f32 %v3106_v57, %v490_v44  ;;  %3107 = vrcp.f32 %v528_v56 }
 0x1fb   :  { %v526_v63 = vsel %vm524_vm6, %v525_v59, %v523_v61  ;;  %v4433_v59 = vmov 920167782  }
 0x1fc   :  { %3109 = vrcp.f32 %v527_v60  ;;  %v516_v1 = vsel %vm515_vm7, %v490_v44, %v514_v62  ;;  %v530_v2 = vadd.f32 0.0001, %v526_v63 }
 0x1fd   :  { %v519_v3 = vsel %vm517_vm8, %v518_v0, %v516_v1  ;;  %v4432_v0 = vmov 1326507024  }
 0x1fe   :  { %v529_v4 = vadd.f32 0.0001, %v519_v3  ;;  %3111 = vrcp.f32 %v530_v2 }
 0x200   :  { %3113 = vrcp.f32 %v529_v4 }
 0x207   :  { %v3108_v5 = vpop.eup %3107 }
 0x208   :  { %v536_v6 = vmul.f32 %v3108_v5, %v528_v56  ;;  %v4435_v56 = vmov 2102212464  }
 0x209   :  { %v3110_v7 = vpop.eup %3109 }
 0x20a   :  { %v535_v8 = vmul.f32 %v3110_v7, %v527_v60  ;;  %v540_v11 = vsub.f32 2.0, %v536_v6 }
 0x20b   :  { %v3112_v9 = vpop.eup %3111 }
 0x20c   :  { %v539_v10 = vsub.f32 2.0, %v535_v8  ;;  %v544_v16 = vmul.f32 %v3108_v5, %v540_v11  ;;  %v538_v19 = vmul.f32 %v3112_v9, %v530_v2 }
 0x20d   :  { %v3114_v12 = vpop.eup %3113 }
 0x20e   :  { %v543_v13 = vmul.f32 %v3110_v7, %v539_v10  ;;  %v537_v14 = vmul.f32 %v3114_v12, %v529_v4  ;;  %v548_v22 = vmul.f32 %v544_v16, %v3453_v17  ;;  %v542_v25 = vsub.f32 2.0, %v538_v19  ;;  %v3512_v17 = vpop.f32.mrf.mxu0 }
 0x20f   :  { %4459 = vst [vmem:[#allocation21_spill] sm:$0xff] %v3512_v17 }
 0x210   :  { %v547_v15 = vmul.f32 %v543_v13, %v3455_v20  ;;  %v541_v18 = vsub.f32 2.0, %v537_v14  ;;  %v546_v27 = vmul.f32 %v3112_v9, %v542_v25 }
 0x212   :  { %2825 = vmatmul.mubr.msk.f32.vlgmr.msra.gmra.mxu0 %vm4455_vm0, %v547_v15  ;;  %v545_v23 = vmul.f32 %v3114_v12, %v541_v18  ;;  %v550_v20 = vmul.f32 %v546_v27, %v3457_v21 }
 0x213   :  { %641 = vmatprep.mubr.f32.mxu0 %v3332_v37 }
 0x214   :  { %v549_v26 = vmul.f32 %v545_v23, %v3461_v24 }
 0x216   :  { %2826 = vmatmul.mubr.msk.f32.gmra.mxu0 %vm4455_vm0, %v548_v22 }
 0x217   :  { %647 = vmatprep.mubr.f32.mxu0 %v3332_v37 }
 0x21a   :  { %2827 = vmatmul.mubr.msk.f32.gmra.mxu0 %vm4455_vm0, %v549_v26 }
 0x21b   :  { %653 = vmatprep.mubr.f32.mxu0 %v3332_v37 }
 0x21e   :  { %2828 = vmatmul.mubr.msk.f32.gmra.mxu0 %vm4455_vm0, %v550_v20 }
 0x2d2   :  { %v3514_v29 = vpop.f32.mrf.mxu0 }
 0x2d3   :  { %v663_v30 = vand.u32 2139095040, %v3514_v29  ;;  %v4426_v2 = vand.u32 2147483647, %v3514_v29 }
 0x2d4   :  { %v3517_v31 = vpop.f32.mrf.mxu0 }
 0x2d5   :  { %v664_v24 = vshrl.u32 %v663_v30, 23  ;;  %v767_v32 = vand.u32 2139095040, %v3517_v31  ;;  %v764_v37 = vand.u32 2147483647, %v3517_v31 }
 0x2d6   :  { %v3531_v54 = vpop.f32.mrf.mxu0 }
 0x2d7   :  { %v2829_v33 = vadd.s32 4294967169, %v664_v24  ;;  %v768_v34 = vshrl.u32 %v767_v32, 23  ;;  %v771_v42 = vand.u32 8388607, %v764_v37  ;;  %4460 = vst [vmem:[#allocation22_spill] sm:$0xff] %v3531_v54  ;;  %v871_v5 = vand.u32 2139095040, %v3531_v54 }
 0x2d9   :  { %v2833_v35 = vadd.s32 4294967169, %v768_v34  ;;  %v670_v36 = vadd.s32 1, %v2829_v33  ;;  %v772_v45 = vor.u32 8388608, %v771_v42 }
 0x2db   :  { %v774_v21 = vadd.s32 1, %v2833_v35  ;;  %vm671_vm9 = vcmp.gt.s32.totalorder %v670_v36, 0  ;;  %v3540_v4 = vshll.u32 %v772_v45, 8 }
 0x2dc   :  { %v672_v38 = vsel %vm671_vm9, %v670_v36, 0 }
 0x2dd   :  { %vm775_vm10 = vcmp.gt.s32.totalorder %v774_v21, 0  ;;  %v674_v41 = vand.u32 31, %v672_v38  ;;  %v3543_v6 = vshrl.u32 %v672_v38, 5 }
 0x2de   :  { %v776_v39 = vsel %vm775_vm10, %v774_v21, 0 }
 0x2df   :  { %v778_v40 = vand.u32 31, %v776_v39  ;;  %v3523_v44 = vsub.s32 32, %v674_v41  ;;  %v3525_v46 = vshrl.u32 %v776_v39, 5  ;;  %v686_v9 = vshll.u32 %v4435_v56, %v674_v41 }
 0x2e0   :  { %v689_v10 = vshll.u32 %v4433_v59, %v674_v41  ;;  %v677_v24 = vshll.u32 %v4437_v47, %v674_v41  ;;  %v680_v35 = vshll.u32 %v4439_v49, %v674_v41  ;;  %v683_v36 = vshll.u32 %v4430_v52, %v674_v41 }
 0x2e1   :  { %v779_v43 = vsub.s32 32, %v778_v40  ;;  %v781_v48 = vshll.u32 %v4437_v47, %v778_v40  ;;  %v784_v51 = vshll.u32 %v4439_v49, %v778_v40  ;;  %v787_v55 = vshll.u32 %v4430_v52, %v778_v40 }
 0x2e2   :  { %v790_v58 = vshll.u32 %v4435_v56, %v778_v40  ;;  %v793_v63 = vshll.u32 %v4433_v59, %v778_v40  ;;  %vm796_vm11 = vcmp.lt.s32.totalorder %v3525_v46, 1  ;;  %vm799_vm12 = vcmp.lt.s32.totalorder %v3525_v46, 4 }
 0x2e3   :  { %v782_v50 = vshrl.u32 %v4439_v49, %v779_v43  ;;  %v785_v53 = vshrl.u32 %v4430_v52, %v779_v43  ;;  %v788_v57 = vshrl.u32 %v4435_v56, %v779_v43  ;;  %v791_v60 = vshrl.u32 %v4433_v59, %v779_v43 }
 0x2e4   :  { %v794_v1 = vshrl.u32 %v4432_v0, %v779_v43  ;;  %v687_v12 = vshrl.u32 %v4433_v59, %v3523_v44  ;;  %vm798_vm13 = vcmp.lt.s32.totalorder %v3525_v46, 3  ;;  %v690_v15 = vshrl.u32 %v4432_v0, %v3523_v44 }
 0x2e5   :  { %v783_v61 = vor.u32 %v782_v50, %v781_v48  ;;  %v786_v62 = vor.u32 %v785_v53, %v784_v51  ;;  %v789_v3 = vor.u32 %v788_v57, %v787_v55  ;;  %v792_v7 = vor.u32 %v791_v60, %v790_v58 }
 0x2e6   :  { %v795_v8 = vor.u32 %v794_v1, %v793_v63  ;;  %vm797_vm14 = vcmp.lt.s32.totalorder %v3525_v46, 2  ;;  %v678_v19 = vshrl.u32 %v4439_v49, %v3523_v44  ;;  %v681_v22 = vshrl.u32 %v4430_v52, %v3523_v44 }
 0x2e7   :  { %v804_v11 = vsel %vm796_vm11, %v783_v61, %v786_v62  ;;  %v805_v13 = vsel %vm799_vm12, %v792_v7, 920167782  ;;  %v808_v14 = vsel %vm796_vm11, %v786_v62, %v789_v3  ;;  %v684_v26 = vshrl.u32 %v4435_v56, %v3523_v44 }
 0x2e8   :  { %v806_v16 = vsel %vm798_vm13, %v789_v3, %v805_v13  ;;  %v809_v18 = vsel %vm799_vm12, %v795_v8, 1326507024  ;;  %v688_v32 = vor.u32 %v687_v12, %v686_v9  ;;  %v691_v21 = vor.u32 %v690_v15, %v689_v10 }
 0x2e9   :  { %v807_v23 = vsel %vm797_vm14, %v804_v11, %v806_v16  ;;  %v810_v25 = vsel %vm798_vm13, %v792_v7, %v809_v18  ;;  %v801_v38 = vsel %vm799_vm12, %v789_v3, 2102212464  ;;  %v667_v39 = vand.u32 8388607, %v4426_v2  ;;  %v3632_v16 = vpop.f32.mrf.mxu0 }
 0x2ea   :  { %v811_v27 = vsel %vm797_vm14, %v808_v14, %v810_v25  ;;  %v3578_v20 = vmul.u32.u64.low %v3540_v4, %v807_v23  ;;  %v3579_v30 = vmul.u32.u64.high %v3540_v4, %v807_v23, %v3578_v20  ;;  %v780_v40 = vshrl.u32 %v4437_v47, %v779_v43  ;;  %4461 = vst [vmem:[#allocation23_spill] sm:$0xff] %v3632_v16 }
 0x2eb   :  { %v3584_v33 = vmul.u32.u64.low %v3540_v4, %v811_v27  ;;  %v3585_v34 = vmul.u32.u64.high %v3540_v4, %v811_v27, %v3584_v33  ;;  %v679_v42 = vor.u32 %v678_v19, %v677_v24  ;;  %v682_v45 = vor.u32 %v681_v22, %v680_v35 }
 0x2ec   :  { %v685_v48 = vor.u32 %v684_v26, %v683_v36  ;;  %vm695_vm15 = vcmp.lt.s32.totalorder %v3543_v6, 4  ;;  %v800_v41 = vsel %vm796_vm11, %v780_v40, %v783_v61  ;;  %v802_v51 = vsel %vm798_vm13, %v786_v62, %v801_v38 }
 0x2ed   :  { %v701_v50 = vsel %vm695_vm15, %v688_v32, 920167782  ;;  %v705_v53 = vsel %vm695_vm15, %v691_v21, 1326507024  ;;  %v822_v55 = vadd.s32 1, %v3579_v30  ;;  %v872_v43 = vshrl.u32 %v871_v5, 23 }
 0x2ee   :  { %vm692_vm1 = vcmp.lt.s32.totalorder %v3543_v6, 1  ;;  %vm694_vm2 = vcmp.lt.s32.totalorder %v3543_v6, 3  ;;  %vm821_vm3 = vc.u32 %v3585_v34, %v3578_v20  ;;  %v668_v57 = vor.u32 8388608, %v667_v39 }
 0x2ef   :  { %v700_v58 = vsel %vm692_vm1, %v679_v42, %v682_v45  ;;  %v702_v60 = vsel %vm694_vm2, %v685_v48, %v701_v50  ;;  %v803_v61 = vsel %vm797_vm14, %v800_v41, %v802_v51  ;;  %v704_v62 = vsel %vm692_vm1, %v682_v45, %v685_v48 }
 0x2f0   :  { %v706_v63 = vsel %vm694_vm2, %v688_v32, %v705_v53  ;;  %vm693_vm4 = vcmp.lt.s32.totalorder %v3543_v6, 2  ;;  %v823_v1 = vsel %vm821_vm3, %v822_v55, %v3579_v30  ;;  %v2837_v3 = vadd.s32 4294967169, %v872_v43 }
 0x2f1   :  { %v703_v5 = vsel %vm693_vm4, %v700_v58, %v702_v60  ;;  %v819_v7 = vmul.u32 %v3540_v4, %v803_v61  ;;  %v707_v46 = vsel %vm693_vm4, %v704_v62, %v706_v63  ;;  %v708_v8 = vshll.u32 %v668_v57, 8 }
 0x2f2   :  { %v878_v12 = vadd.s32 1, %v2837_v3  ;;  %v697_v18 = vsel %vm695_vm15, %v685_v48, 2102212464  ;;  %v676_v4 = vshrl.u32 %v4437_v47, %v3523_v44  ;;  %v975_v19 = vand.u32 2139095040, %v3632_v16 }
 0x2f3   :  { %v824_v9 = vadd.s32 %v823_v1, %v819_v7  ;;  %v3625_v10 = vmul.u32.u64.low %v708_v8, %v703_v5  ;;  %v3626_v11 = vmul.u32.u64.high %v708_v8, %v703_v5, %v3625_v10  ;;  %v698_v23 = vsel %vm694_vm2, %v682_v45, %v697_v18  ;;  %v3671_v5 = vpop.f32.mrf.mxu0 }
 0x2f4   :  { %v3629_v13 = vmul.u32.u64.low %v708_v8, %v707_v46  ;;  %v3630_v14 = vmul.u32.u64.high %v708_v8, %v707_v46, %v3629_v13  ;;  %vm879_vm5 = vcmp.gt.s32.totalorder %v878_v12, 0  ;;  %v696_v22 = vsel %vm692_vm1, %v676_v4, %v679_v42 }
 0x2f5   :  { %v825_v15 = vadd.s32 536870912, %v824_v9  ;;  %v880_v26 = vsel %vm879_vm5, %v878_v12, 0  ;;  %v718_v27 = vadd.s32 1, %v3626_v11  ;;  %v699_v30 = vsel %vm693_vm4, %v696_v22, %v698_v23 }
 0x2f6   :  { %vm717_vm6 = vc.u32 %v3630_v14, %v3625_v10  ;;  %v882_v44 = vand.u32 31, %v880_v26  ;;  %v976_v24 = vshrl.u32 %v975_v19, 23  ;;  %v715_v35 = vmul.u32 %v708_v8, %v699_v30 }
 0x2f7   :  { %v3643_v25 = vshrl.u32 %v825_v15, 30  ;;  %v719_v33 = vsel %vm717_vm6, %v718_v27, %v3626_v11  ;;  %v4424_v40 = vand.u32 2147483647, %v3531_v54  ;;  %v881_v55 = vshrl.u32 %v880_v26, 5 }
 0x2f8   :  { %v883_v36 = vsub.s32 32, %v882_v44  ;;  %v2841_v21 = vadd.s32 4294967169, %v976_v24  ;;  %v720_v38 = vadd.s32 %v719_v33, %v715_v35  ;;  %v894_v51 = vshll.u32 %v4435_v56, %v882_v44 }
 0x2f9   :  { %v827_v32 = vshll.u32 %v3643_v25, 30  ;;  %v875_v53 = vand.u32 8388607, %v4424_v40  ;;  %v4425_v57 = vand.u32 2147483647, %v3632_v16  ;;  %v885_v58 = vshll.u32 %v4437_v47, %v882_v44 }
 0x2fa   :  { %v895_v42 = vshrl.u32 %v4433_v59, %v883_v36  ;;  %v982_v45 = vadd.s32 1, %v2841_v21  ;;  %v721_v48 = vadd.s32 536870912, %v720_v38  ;;  %v886_v50 = vshrl.u32 %v4439_v49, %v883_v36 }
 0x2fb   :  { %v3652_v39 = vsub.s32 %v824_v9, %v827_v32  ;;  %v889_v41 = vshrl.u32 %v4430_v52, %v883_v36  ;;  %v892_v43 = vshrl.u32 %v4435_v56, %v883_v36  ;;  %v888_v60 = vshll.u32 %v4439_v49, %v882_v44 }
 0x2fc   :  { %v896_v61 = vor.u32 %v895_v42, %v894_v51  ;;  %vm983_vm7 = vcmp.gt.s32.totalorder %v982_v45, 0  ;;  %v3666_v62 = vshrl.u32 %v721_v48, 30  ;;  %v891_v1 = vshll.u32 %v4430_v52, %v882_v44 }
 0x2fd   :  { %v830_v6 = vsub.s32 0, %v3652_v39  ;;  %v898_v3 = vshrl.u32 %v4432_v0, %v883_v36  ;;  %v887_v7 = vor.u32 %v886_v50, %v885_v58  ;;  %v890_v46 = vor.u32 %v889_v41, %v888_v60 }
 0x2fe   :  { %4462 = vst [vmem:[#allocation24_spill] sm:$0xff] %v3666_v62  ;;  %v893_v8 = vor.u32 %v892_v43, %v891_v1  ;;  %v897_v9 = vshll.u32 %v4433_v59, %v882_v44  ;;  %vm903_vm8 = vcmp.lt.s32.totalorder %v881_v55, 4  ;;  %v984_v11 = vsel %vm983_vm7, %v982_v45, 0 }
 0x2ff   :  { %v2834_v63 = vmin.u32 %v830_v6, %v3652_v39  ;;  %v876_v12 = vor.u32 8388608, %v875_v53  ;;  %v909_v13 = vsel %vm903_vm8, %v896_v61, 920167782  ;;  %v1079_v15 = vand.u32 2139095040, %v3671_v5  ;;  %v3699_v53 = vpop.f32.mrf.mxu0 }
 0x300   :  { %v723_v18 = vshll.u32 %v3666_v62, 30  ;;  %v899_v19 = vor.u32 %v898_v3, %v897_v9  ;;  %v3679_v22 = vand.u32 8388607, %v4425_v57  ;;  %vm900_vm9 = vcmp.lt.s32.totalorder %v881_v55, 1 }
 0x301   :  { %v832_v4 = vclz %v2834_v63  ;;  %vm902_vm10 = vcmp.lt.s32.totalorder %v881_v55, 3  ;;  %v986_v23 = vand.u32 31, %v984_v11  ;;  %v1080_v26 = vshrl.u32 %v1079_v15, 23 }
 0x302   :  { %v884_v27 = vshrl.u32 %v4437_v47, %v883_v36  ;;  %v905_v30 = vsel %vm903_vm8, %v893_v8, 2102212464  ;;  %v908_v44 = vsel %vm900_vm9, %v887_v7, %v890_v46  ;;  %v910_v24 = vsel %vm902_vm10, %v893_v8, %v909_v13 }
 0x303   :  { %v2845_v32 = vadd.s32 4294967169, %v1080_v26  ;;  %v2835_v33 = vadd.s32 4294967294, %v832_v4  ;;  %vm901_vm11 = vcmp.lt.s32.totalorder %v881_v55, 2  ;;  %v913_v21 = vsel %vm903_vm8, %v899_v19, 1326507024 }
 0x304   :  { %v904_v35 = vsel %vm900_vm9, %v884_v27, %v887_v7  ;;  %v906_v42 = vsel %vm902_vm10, %v890_v46, %v905_v30  ;;  %v3689_v45 = vsel %vm901_vm11, %v908_v44, %v910_v24  ;;  %v3691_v48 = vsub.s32 32, %v986_v23 }
 0x305   :  { %v1086_v36 = vadd.s32 1, %v2845_v32  ;;  %v3693_v6 = vsub.s32 %v720_v38, %v723_v18  ;;  %v3695_v50 = vshll.u32 %v876_v12, 8  ;;  %v980_v41 = vor.u32 8388608, %v3679_v22 }
 0x306   :  { %v4427_v51 = vand.u32 2147483647, %v3671_v5  ;;  %v3703_v43 = vadd.s32 %v3578_v20, %v3585_v34  ;;  %v912_v58 = vsel %vm900_vm9, %v890_v46, %v893_v8  ;;  %v914_v60 = vsel %vm902_vm10, %v896_v61, %v913_v21 }
 0x307   :  { %vm1087_vm12 = vcmp.gt.s32.totalorder %v1086_v36, 0  ;;  %vm2836_vm13 = vcmp.lt.s32.totalorder %v2835_v33, 0  ;;  %v3708_v38 = vsel %vm901_vm11, %v904_v35, %v906_v42  ;;  %v990_v3 = vshrl.u32 %v4439_v49, %v3691_v48 }
 0x308   :  { %v3712_v63 = vmul.u32.u64.low %v3695_v50, %v3689_v45  ;;  %v3713_v1 = vmul.u32.u64.high %v3695_v50, %v3689_v45, %v3712_v63  ;;  %v993_v20 = vshrl.u32 %v4430_v52, %v3691_v48  ;;  %v1088_v34 = vsel %vm1087_vm12, %v1086_v36, 0 }
 0x309   :  { %v1183_v61 = vand.u32 2139095040, %v3699_v53  ;;  %v3722_v7 = vsel %vm901_vm11, %v912_v58, %v914_v60  ;;  %v996_v46 = vshrl.u32 %v4435_v56, %v3691_v48  ;;  %v1002_v8 = vshrl.u32 %v4432_v0, %v3691_v48 }
 0x30a   :  { %v1090_v9 = vand.u32 31, %v1088_v34  ;;  %v3728_v12 = vshrl.u32 %v984_v11, 5  ;;  %v989_v13 = vshll.u32 %v4437_v47, %v986_v23  ;;  %v992_v15 = vshll.u32 %v4439_v49, %v986_v23 }
 0x30b   :  { %v995_v18 = vshll.u32 %v4430_v52, %v986_v23  ;;  %v3733_v4 = vsel %vm2836_vm13, 0, %v2835_v33  ;;  %v998_v55 = vshll.u32 %v4435_v56, %v986_v23  ;;  %v1001_v19 = vshll.u32 %v4433_v59, %v986_v23 }
 0x30c   :  { %v1091_v26 = vsub.s32 32, %v1090_v9  ;;  %v3737_v27 = vor.u32 %v990_v3, %v989_v13  ;;  %v3739_v30 = vor.u32 %v993_v20, %v992_v15  ;;  %v1083_v11 = vand.u32 8388607, %v4427_v51 }
 0x30d   :  { %v1184_v44 = vshrl.u32 %v1183_v61, 23  ;;  %v3743_v24 = vor.u32 %v996_v46, %v995_v18  ;;  %v999_v32 = vshrl.u32 %v4433_v59, %v3691_v48  ;;  %v1003_v33 = vor.u32 %v1002_v8, %v1001_v19 }
 0x30e   :  { %v1094_v35 = vshrl.u32 %v4439_v49, %v1091_v26  ;;  %v1093_v21 = vshll.u32 %v4437_v47, %v1090_v9  ;;  %v1096_v23 = vshll.u32 %v4439_v49, %v1090_v9  ;;  %v1097_v42 = vshrl.u32 %v4430_v52, %v1091_v26 }
 0x30f   :  { %v1100_v45 = vshrl.u32 %v4435_v56, %v1091_v26  ;;  %v1089_v36 = vshrl.u32 %v1088_v34, 5  ;;  %v1099_v58 = vshll.u32 %v4430_v52, %v1090_v9  ;;  %v1102_v60 = vshll.u32 %v4435_v56, %v1090_v9 }
 0x310   :  { %v1103_v3 = vshrl.u32 %v4433_v59, %v1091_v26  ;;  %v1084_v20 = vor.u32 8388608, %v1083_v11  ;;  %v1095_v61 = vor.u32 %v1094_v35, %v1093_v21  ;;  %v1098_v46 = vor.u32 %v1097_v42, %v1096_v23 }
 0x311   :  { %v2849_v8 = vadd.s32 4294967169, %v1184_v44  ;;  %v1101_v13 = vor.u32 %v1100_v45, %v1099_v58  ;;  %v1105_v18 = vshll.u32 %v4433_v59, %v1090_v9  ;;  %v1106_v19 = vshrl.u32 %v4432_v0, %v1091_v26 }
 0x312   :  { %v1104_v15 = vor.u32 %v1103_v3, %v1102_v60  ;;  %v1000_v40 = vor.u32 %v999_v32, %v998_v55  ;;  %vm1004_vm14 = vcmp.lt.s32.totalorder %v3728_v12, 1  ;;  %vm1006_vm15 = vcmp.lt.s32.totalorder %v3728_v12, 3 }
 0x313   :  { %vm1007_vm1 = vcmp.lt.s32.totalorder %v3728_v12, 4  ;;  %v1107_v11 = vor.u32 %v1106_v19, %v1105_v18  ;;  %vm1108_vm2 = vcmp.lt.s32.totalorder %v1089_v36, 1  ;;  %vm1111_vm3 = vcmp.lt.s32.totalorder %v1089_v36, 4 }
 0x314   :  { %v1017_v34 = vsel %vm1007_vm1, %v1003_v33, 1326507024  ;;  %vm1110_vm4 = vcmp.lt.s32.totalorder %v1089_v36, 3  ;;  %v1116_v44 = vsel %vm1108_vm2, %v1095_v61, %v1098_v46  ;;  %v1117_v35 = vsel %vm1111_vm3, %v1104_v15, 920167782 }
 0x315   :  { %v1124_v9 = vshll.u32 %v1084_v20, 8  ;;  %vm1109_vm5 = vcmp.lt.s32.totalorder %v1089_v36, 2  ;;  %v1118_v55 = vsel %vm1110_vm4, %v1101_v13, %v1117_v35  ;;  %v1120_v32 = vsel %vm1108_vm2, %v1098_v46, %v1101_v13 }
 0x316   :  { %v1190_v21 = vadd.s32 1, %v2849_v8  ;;  %v1092_v23 = vshrl.u32 %v4437_v47, %v1091_v26  ;;  %v1113_v42 = vsel %vm1111_vm3, %v1101_v13, 2102212464  ;;  %v1119_v45 = vsel %vm1109_vm5, %v1116_v44, %v1118_v55 }
 0x317   :  { %v1121_v33 = vsel %vm1111_vm3, %v1107_v11, 1326507024  ;;  %v1013_v58 = vsel %vm1007_vm1, %v1000_v40, 920167782  ;;  %v3770_v3 = vmul.u32.u64.low %v1124_v9, %v1119_v45  ;;  %v3771_v18 = vmul.u32.u64.high %v1124_v9, %v1119_v45, %v3770_v3 }
 0x318   :  { %v1122_v60 = vsel %vm1110_vm4, %v1104_v15, %v1121_v33  ;;  %v1016_v20 = vsel %vm1004_vm14, %v3739_v30, %v3743_v24  ;;  %v1018_v26 = vsel %vm1006_vm15, %v1000_v40, %v1017_v34  ;;  %v1112_v8 = vsel %vm1108_vm2, %v1092_v23, %v1095_v61 }
 0x319   :  { %v1123_v13 = vsel %vm1109_vm5, %v1120_v32, %v1122_v60  ;;  %v1114_v19 = vsel %vm1110_vm4, %v1098_v46, %v1113_v42  ;;  %vm1191_vm6 = vcmp.gt.s32.totalorder %v1190_v21, 0  ;;  %vm1005_vm7 = vcmp.lt.s32.totalorder %v3728_v12, 2 }
 0x31a   :  { %v3783_v11 = vmul.u32.u64.low %v1124_v9, %v1123_v13  ;;  %v3784_v15 = vmul.u32.u64.high %v1124_v9, %v1123_v13, %v3783_v11  ;;  %v1012_v44 = vsel %vm1004_vm14, %v3737_v27, %v3739_v30  ;;  %v1014_v40 = vsel %vm1006_vm15, %v3743_v24, %v1013_v58 }
 0x31b   :  { %v1192_v61 = vsel %vm1191_vm6, %v1190_v21, 0  ;;  %v840_v34 = vsub.s32 4294967266, %v3733_v4  ;;  %v1019_v46 = vsel %vm1005_vm7, %v1016_v20, %v1018_v26  ;;  %v1134_v35 = vadd.s32 1, %v3771_v18 }
 0x31c   :  { %v1194_v55 = vand.u32 31, %v1192_v61  ;;  %v3800_v32 = vmul.u32.u64.low %v3695_v50, %v3722_v7  ;;  %v3801_v23 = vmul.u32.u64.high %v3695_v50, %v3722_v7, %v3800_v32  ;;  %v3805_v42 = vshll.u32 %v980_v41, 8 }
 0x31d   :  { %v1115_v45 = vsel %vm1109_vm5, %v1112_v8, %v1114_v19  ;;  %v836_v21 = vsub.s32 32, %v3733_v4  ;;  %v1015_v33 = vsel %vm1005_vm7, %v1012_v44, %v1014_v40  ;;  %vm1133_vm8 = vc.u32 %v3784_v15, %v3770_v3 }
 0x31e   :  { %v1195_v58 = vsub.s32 32, %v1194_v55  ;;  %v3814_v60 = vadd.s32 1, %v3713_v1  ;;  %v3817_v7 = vmul.u32.u64.low %v3805_v42, %v1019_v46  ;;  %v3818_v20 = vmul.u32.u64.high %v3805_v42, %v1019_v46, %v3817_v7 }
 0x31f   :  { %v1135_v22 = vsel %vm1133_vm8, %v1134_v35, %v3771_v18  ;;  %v841_v41 = vadd.s32 127, %v840_v34  ;;  %v1131_v36 = vmul.u32 %v1124_v9, %v1115_v45  ;;  %v4429_v26 = vand.u32 2147483647, %v3699_v53 }
 0x320   :  { %v1198_v8 = vshrl.u32 %v4439_v49, %v1195_v58  ;;  %v3824_v13 = vmul.u32.u64.low %v3805_v42, %v1015_v33  ;;  %v3825_v19 = vmul.u32.u64.high %v3805_v42, %v1015_v33, %v3824_v13  ;;  %v1201_v11 = vshrl.u32 %v4430_v52, %v1195_v58 }
 0x321   :  { %v1204_v44 = vshrl.u32 %v4435_v56, %v1195_v58  ;;  %v838_v40 = vshrl.u32 %v3703_v43, %v836_v21  ;;  %v3831_v46 = vadd.s32 %v1135_v22, %v1131_v36  ;;  %v3833_v18 = vshrl.u32 %v1192_v61, 5  ;;  %v3843_v21 = vpop.f32.mrf.mxu0 }
 0x322   :  { %v1197_v9 = vshll.u32 %v4437_v47, %v1194_v55  ;;  %v1200_v34 = vshll.u32 %v4439_v49, %v1194_v55  ;;  %v1203_v35 = vshll.u32 %v4430_v52, %v1194_v55  ;;  %v1206_v32 = vshll.u32 %v4435_v56, %v1194_v55 }
 0x323   :  { %v1207_v45 = vshrl.u32 %v4433_v59, %v1195_v58  ;;  %v842_v33 = vshll.u32 %v841_v41, 23  ;;  %v1187_v7 = vand.u32 8388607, %v4429_v26  ;;  %v1210_v43 = vshrl.u32 %v4432_v0, %v1195_v58 }
 0x324   :  { %v1199_v57 = vor.u32 %v1198_v8, %v1197_v9  ;;  %v1202_v61 = vor.u32 %v1201_v11, %v1200_v34  ;;  %v1205_v22 = vor.u32 %v1204_v44, %v1203_v35  ;;  %v1209_v2 = vshll.u32 %v4433_v59, %v1194_v55 }
 0x325   :  { %v1208_v36 = vor.u32 %v1207_v45, %v1206_v32  ;;  %v837_v51 = vshll.u32 %v3652_v39, %v3733_v4  ;;  %vm925_vm9 = vc.u32 %v3801_v23, %v3712_v63  ;;  %v988_v41 = vshrl.u32 %v4437_v47, %v3691_v48 }
 0x326   :  { %v1137_v8 = vadd.s32 536870912, %v3831_v46  ;;  %v1009_v9 = vsel %vm1007_vm1, %v3743_v24, 2102212464  ;;  %v1211_v11 = vor.u32 %v1210_v43, %v1209_v2  ;;  %vm1215_vm10 = vcmp.lt.s32.totalorder %v3833_v18, 4 }
 0x327   :  { %v1287_v55 = vand.u32 2139095040, %v3843_v21  ;;  %v839_v44 = vor.u32 %v838_v40, %v837_v51  ;;  %vm1212_vm11 = vcmp.lt.s32.totalorder %v3833_v18, 1  ;;  %vm1214_vm12 = vcmp.lt.s32.totalorder %v3833_v18, 3 }
 0x328   :  { %v1221_v39 = vsel %vm1215_vm10, %v1208_v36, 920167782  ;;  %v843_v48 = vor.u32 4788187, %v842_v33  ;;  %v1188_v4 = vor.u32 8388608, %v1187_v7  ;;  %v1220_v34 = vsel %vm1212_vm11, %v1199_v57, %v1202_v61 }
 0x329   :  { %v1222_v2 = vsel %vm1214_vm12, %v1205_v22, %v1221_v39  ;;  %v1008_v24 = vsel %vm1004_vm14, %v988_v41, %v3737_v27  ;;  %v1010_v51 = vsel %vm1006_vm15, %v3739_v30, %v1009_v9  ;;  %v1030_v40 = vadd.s32 1, %v3825_v19 }
 0x32a   :  { %v3873_v35 = vshrl.u32 %v1137_v8, 30  ;;  %vm1029_vm13 = vc.u32 %v3818_v20, %v3824_v13  ;;  %vm1213_vm1 = vcmp.lt.s32.totalorder %v3833_v18, 2  ;;  %v1225_v32 = vsel %vm1215_vm10, %v1211_v11, 1326507024  ;;  %v3928_v18 = vpop.f32.mrf.mxu0 }
 0x32b   :  { %v1288_v45 = vshrl.u32 %v1287_v55, 23  ;;  %v1196_v33 = vshrl.u32 %v4437_v47, %v1195_v58  ;;  %v1217_v27 = vsel %vm1215_vm10, %v1205_v22, 2102212464  ;;  %v1223_v30 = vsel %vm1213_vm1, %v1220_v34, %v1222_v2  ;;  %4463 = vst [vmem:[#allocation25_spill] sm:$0xff] %v3928_v18 }
 0x32c   :  { %v1224_v7 = vsel %vm1212_vm11, %v1202_v61, %v1205_v22  ;;  %v846_v43 = vcvt.s32.f32 %v839_v44  ;;  %v1011_v41 = vsel %vm1005_vm7, %v1008_v24, %v1010_v51  ;;  %v1226_v8 = vsel %vm1214_vm12, %v1208_v36, %v1225_v32 }
 0x32d   :  { %v1228_v9 = vshll.u32 %v1188_v4, 8  ;;  %v844_v11 = vand.u32 2147483647, %v843_v48  ;;  %v1031_v58 = vsel %vm1029_vm13, %v1030_v40, %v3825_v19  ;;  %v1139_v55 = vshll.u32 %v3873_v35, 30 }
 0x32e   :  { %v1216_v39 = vsel %vm1212_vm11, %v1196_v33, %v1199_v57  ;;  %v1218_v34 = vsel %vm1214_vm12, %v1202_v61, %v1217_v27  ;;  %v1227_v22 = vsel %vm1213_vm1, %v1224_v7, %v1226_v8  ;;  %v1027_v36 = vmul.u32 %v3805_v42, %v1011_v41 }
 0x32f   :  { %v3899_v12 = vmul.u32.u64.low %v1228_v9, %v1223_v30  ;;  %v3900_v44 = vmul.u32.u64.high %v1228_v9, %v1223_v30, %v3899_v12  ;;  %v3904_v48 = vmul.u32.u64.low %v1228_v9, %v1227_v22  ;;  %v3905_v4 = vmul.u32.u64.high %v1228_v9, %v1227_v22, %v3904_v48 }
 0x330   :  { %v2853_v19 = vadd.s32 4294967169, %v1288_v45  ;;  %v927_v57 = vsel %vm925_vm9, %v3814_v60, %v3713_v1  ;;  %v847_v61 = vmul.f32 %v846_v43, %v844_v11  ;;  %v3912_v2 = vadd.s32 %v1031_v58, %v1027_v36 }
 0x331   :  { %v1219_v24 = vsel %vm1213_vm1, %v1216_v39, %v1218_v34  ;;  %v923_v42 = vmul.u32 %v3695_v50, %v3708_v38  ;;  %v3919_v40 = vsub.s32 %v3831_v46, %v1139_v55  ;;  %v1238_v32 = vadd.s32 1, %v3900_v44 }
 0x332   :  { %v1294_v51 = vadd.s32 1, %v2853_v19  ;;  %v726_v45 = vsub.s32 0, %v3693_v6  ;;  %v4428_v33 = vand.u32 2147483647, %v3843_v21  ;;  %v1235_v60 = vmul.u32 %v1228_v9, %v1219_v24 }
 0x333   :  { %v3924_v1 = vadd.s32 %v927_v57, %v923_v42  ;;  %vm1237_vm14 = vc.u32 %v3905_v4, %v3899_v12  ;;  %v848_v27 = vxor.u32 2147483648, %v847_v61  ;;  %v1033_v50 = vadd.s32 536870912, %v3912_v2 }
 0x334   :  { %vm1295_vm15 = vcmp.gt.s32.totalorder %v1294_v51, 0  ;;  %v1239_v38 = vsel %vm1237_vm14, %v1238_v32, %v3900_v44  ;;  %v1142_v30 = vsub.s32 0, %v3919_v40  ;;  %v1291_v41 = vand.u32 8388607, %v4428_v33 }
 0x335   :  { %v1296_v46 = vsel %vm1295_vm15, %v1294_v51, 0  ;;  %v1240_v7 = vadd.s32 %v1239_v38, %v1235_v60  ;;  %v1391_v8 = vand.u32 2139095040, %v3928_v18  ;;  %vm766_vm2 = vcmp.lt.s32.totalorder %v3517_v31, 0 }
 0x336   :  { %v1298_v43 = vand.u32 31, %v1296_v46  ;;  %v2830_v58 = vmin.u32 %v726_v45, %v3693_v6  ;;  %v849_v55 = vsel %vm766_vm2, %v848_v27, %v847_v61  ;;  %v929_v39 = vadd.s32 536870912, %v3924_v1 }
 0x337   :  { %v1241_v9 = vadd.s32 536870912, %v1240_v7  ;;  %v3941_v34 = vshrl.u32 %v1033_v50, 30  ;;  %v2846_v22 = vmin.u32 %v1142_v30, %v3919_v40  ;;  %v1292_v19 = vor.u32 8388608, %v1291_v41 }
 0x338   :  { %v1299_v11 = vsub.s32 32, %v1298_v43  ;;  %v1392_v51 = vshrl.u32 %v1391_v8, 23  ;;  %v1301_v42 = vshll.u32 %v4437_v47, %v1298_v43  ;;  %v1304_v32 = vshll.u32 %v4439_v49, %v1298_v43 }
 0x339   :  { %4464 = vst [vmem:[#allocation26_spill] sm:$0xff] %v3941_v34  ;;  %v3944_v44 = vshrl.u32 %v1241_v9, 30  ;;  %v1307_v45 = vshll.u32 %v4430_v52, %v1298_v43  ;;  %v1297_v60 = vshrl.u32 %v1296_v46, 5  ;;  %v1310_v27 = vshll.u32 %v4435_v56, %v1298_v43 }
 0x33a   :  { %v1302_v36 = vshrl.u32 %v4439_v49, %v1299_v11  ;;  %v1305_v48 = vshrl.u32 %v4430_v52, %v1299_v11  ;;  %v1308_v57 = vshrl.u32 %v4435_v56, %v1299_v11  ;;  %v1311_v24 = vshrl.u32 %v4433_v59, %v1299_v11 }
 0x33b   :  { %v1243_v61 = vshll.u32 %v3944_v44, 30  ;;  %v1313_v50 = vshll.u32 %v4433_v59, %v1298_v43  ;;  %v1314_v38 = vshrl.u32 %v4432_v0, %v1299_v11  ;;  %v728_v33 = vclz %v2830_v58 }
 0x33c   :  { %v1303_v41 = vor.u32 %v1302_v36, %v1301_v42  ;;  %v1306_v9 = vor.u32 %v1305_v48, %v1304_v32  ;;  %v1309_v8 = vor.u32 %v1308_v57, %v1307_v45  ;;  %vm3961_vm3 = vcmp.le.f32.partialorder %v764_v37, 0.7853982 }
 0x33d   :  { %v3957_v30 = vsub.s32 %v1240_v7, %v1243_v61  ;;  %v1312_v52 = vor.u32 %v1311_v24, %v1310_v27  ;;  %v852_v46 = vsel %vm3961_vm3, %v3517_v31, %v849_v55  ;;  %v3968_v43 = vshrl.u32 %v929_v39, 30 }
 0x33e   :  { %v1315_v61 = vor.u32 %v1314_v38, %v1313_v50  ;;  %v1035_v36 = vshll.u32 %v3941_v34, 30  ;;  %v1144_v48 = vclz %v2846_v22  ;;  %vm1316_vm4 = vcmp.lt.s32.totalorder %v1297_v60, 1 }
 0x33f   :  { %4467 = vst [vmem:[#allocation27_spill] sm:$0xff] %v3968_v43  ;;  %v1246_v7 = vsub.s32 0, %v3957_v30  ;;  %vm1319_vm5 = vcmp.lt.s32.totalorder %v1297_v60, 4  ;;  %v1324_v37 = vsel %vm1316_vm4, %v1303_v41, %v1306_v9  ;;  %v1332_v57 = vshll.u32 %v1292_v19, 8 }
 0x340   :  { %v1321_v58 = vsel %vm1319_vm5, %v1309_v8, 2102212464  ;;  %v2857_v42 = vadd.s32 4294967169, %v1392_v51  ;;  %v1300_v24 = vshrl.u32 %v4437_v47, %v1299_v11  ;;  %vm1318_vm6 = vcmp.lt.s32.totalorder %v1297_v60, 3 }
 0x341   :  { %v1325_v32 = vsel %vm1319_vm5, %v1312_v52, 920167782  ;;  %v1328_v45 = vsel %vm1316_vm4, %v1306_v9, %v1309_v8  ;;  %v2850_v55 = vmin.u32 %v1246_v7, %v3957_v30  ;;  %vm1317_vm7 = vcmp.lt.s32.totalorder %v1297_v60, 2 }
 0x342   :  { %v1326_v39 = vsel %vm1318_vm6, %v1309_v8, %v1325_v32  ;;  %v1329_v27 = vsel %vm1319_vm5, %v1315_v61, 1326507024  ;;  %v1320_v50 = vsel %vm1316_vm4, %v1300_v24, %v1303_v41  ;;  %v1322_v38 = vsel %vm1318_vm6, %v1306_v9, %v1321_v58 }
 0x343   :  { %v1327_v22 = vsel %vm1317_vm7, %v1324_v37, %v1326_v39  ;;  %v1330_v0 = vsel %vm1318_vm6, %v1312_v52, %v1329_v27  ;;  %v2847_v59 = vadd.s32 4294967294, %v1144_v48  ;;  %v931_v11 = vshll.u32 %v3968_v43, 30 }
 0x344   :  { %v1331_v56 = vsel %vm1317_vm7, %v1328_v45, %v1330_v0  ;;  %v3976_v19 = vmul.u32.u64.low %v1332_v57, %v1327_v22  ;;  %v3977_v51 = vmul.u32.u64.high %v1332_v57, %v1327_v22, %v3976_v19  ;;  %v1398_v7 = vadd.s32 1, %v2857_v42 }
 0x345   :  { %v3981_v47 = vmul.u32.u64.low %v1332_v57, %v1331_v56  ;;  %v3982_v49 = vmul.u32.u64.high %v1332_v57, %v1331_v56, %v3981_v47  ;;  %v2831_v8 = vadd.s32 4294967294, %v728_v33  ;;  %v3985_v41 = vsub.s32 %v3912_v2, %v1035_v36 }
 0x346   :  { %v1248_v9 = vclz %v2850_v55  ;;  %v1323_v52 = vsel %vm1317_vm7, %v1320_v50, %v1322_v38  ;;  %3115 = vcosq.f32 %v852_v46  ;;  %vm1399_vm8 = vcmp.gt.s32.totalorder %v1398_v7, 0 }
 0x347   :  { %v850_v0 = vsub.s32 4, %v3643_v25  ;;  %3117 = vsinq.f32 %v852_v46  ;;  %vm2848_vm9 = vcmp.lt.s32.totalorder %v2847_v59, 0  ;;  %v1342_v61 = vadd.s32 1, %v3977_v51 }
 0x348   :  { %v3991_v48 = vsub.s32 %v3924_v1, %v931_v11  ;;  %v1339_v47 = vmul.u32 %v1332_v57, %v1323_v52  ;;  %vm1341_vm10 = vc.u32 %v3982_v49, %v3976_v19  ;;  %v1400_v56 = vsel %vm1399_vm8, %v1398_v7, 0 }
 0x349   :  { %vm2832_vm11 = vcmp.lt.s32.totalorder %v2831_v8, 0  ;;  %v1038_v2 = vsub.s32 0, %v3985_v41  ;;  %v2851_v33 = vadd.s32 4294967294, %v1248_v9  ;;  %v1343_v60 = vsel %vm1341_vm10, %v1342_v61, %v3977_v51 }
 0x34a   :  { %4468 = vst [vmem:[#allocation28_spill] sm:$0xff] %v3991_v48  ;;  %v3997_v36 = vsel %vm2848_vm9, 0, %v2847_v59  ;;  %v1344_v46 = vadd.s32 %v1343_v60, %v1339_v47  ;;  %v1402_v58 = vand.u32 31, %v1400_v56  ;;  %v4441_v37 = vand.u32 2147483647, %v3928_v18 }
 0x34b   :  { %v4000_v42 = vsel %vm2832_vm11, 0, %v2831_v8  ;;  %v934_v1 = vsub.s32 0, %v3991_v48  ;;  %v851_v24 = vsel %vm766_vm2, %v850_v0, %v3643_v25  ;;  %v4007_v32 = vmin.u32 %v1038_v2, %v3985_v41 }
 0x34c   :  { %v1345_v57 = vadd.s32 536870912, %v1344_v46  ;;  %v1152_v45 = vsub.s32 4294967266, %v3997_v36  ;;  %vm2852_vm12 = vcmp.lt.s32.totalorder %v2851_v33, 0  ;;  %v1403_v55 = vsub.s32 32, %v1402_v58 }
 0x34d   :  { %v1148_v27 = vsub.s32 32, %v3997_v36  ;;  %v1395_v50 = vand.u32 8388607, %v4441_v37  ;;  %v4017_v38 = vmin.u32 %v934_v1, %v3991_v48  ;;  %v4019_v25 = vsel %vm2852_vm12, 0, %v2851_v33 }
 0x34e   :  { %v4010_v59 = vshrl.u32 %v1345_v57, 30  ;;  %v853_v51 = vsel %vm3961_vm3, 0, %v851_v24  ;;  %v1132_v7 = vadd.s32 %v3770_v3, %v3784_v15  ;;  %v4029_v9 = vadd.s32 127, %v1152_v45 }
 0x34f   :  { %v4469_v0 = vmov 2475754826   ;;  %v4470_v47 = vmov 2131351028   ;;  %v4471_v33 = vmov 2102212464   ;;  %vm856_vm6 = vweird.f32 %v3517_v31 }
 0x350   :  { %v1347_v22 = vshll.u32 %v4010_v59, 30  ;;  %v1406_v61 = vshrl.u32 %v4469_v0, %v1403_v55  ;;  %v1409_v2 = vshrl.u32 %v4470_v47, %v1403_v55  ;;  %v1412_v60 = vshrl.u32 %v4471_v33, %v1403_v55 }
 0x351   :  { %v1150_v1 = vshrl.u32 %v1132_v7, %v1148_v27  ;;  %v1256_v57 = vsub.s32 4294967266, %v4019_v25  ;;  %v1396_v24 = vor.u32 8388608, %v1395_v50  ;;  %v1688_v3 = vand.u32 3, %v853_v51 }
 0x352   :  { %v4031_v52 = vsub.s32 %v1344_v46, %v1347_v22  ;;  %v4472_v37 = vmov 683565275   ;;  %v1408_v22 = vshll.u32 %v4469_v0, %v1402_v58  ;;  %v1411_v11 = vshll.u32 %v4470_v47, %v1402_v58 }
 0x353   :  { %v4036_v26 = vpop.eup %3115  ;;  %v1405_v46 = vshll.u32 %v4472_v37, %v1402_v58  ;;  %v1154_v39 = vshll.u32 %v4029_v9, 23  ;;  %v1401_v8 = vshrl.u32 %v1400_v56, 5  ;;  %v1414_v17 = vshll.u32 %v4471_v33, %v1402_v58 }
 0x354   :  { %v4039_v15 = vpop.eup %3117  ;;  %v1350_v45 = vsub.s32 0, %v4031_v52  ;;  %v4473_v27 = vmov 920167782   ;;  %v1410_v43 = vor.u32 %v1409_v2, %v1408_v22  ;;  %v1413_v34 = vor.u32 %v1412_v60, %v1411_v11 }
 0x355   :  { %v1415_v7 = vshrl.u32 %v4473_v27, %v1403_v55  ;;  %v1407_v28 = vor.u32 %v1406_v61, %v1405_v46  ;;  %v4049_v62 = vshll.u32 %v1396_v24, 8  ;;  %v861_v16 = vxor.u32 2147483648, %v4039_v15 }
 0x356   :  { %v2854_v50 = vmin.u32 %v1350_v45, %v4031_v52  ;;  %v864_v0 = vxor.u32 2147483648, %v4036_v26  ;;  %v4053_v47 = vadd.s32 127, %v1256_v57  ;;  %vm1690_vm13 = vcmp.eq.s32.totalorder %v1688_v3, 0 }
 0x357   :  { %v1416_v54 = vor.u32 %v1415_v7, %v1414_v17  ;;  %v857_v56 = vadd.s32 3, %v853_v51  ;;  %v1417_v33 = vshll.u32 %v4473_v27, %v1402_v58  ;;  %v4474_v18 = vmov 1326507024  }
 0x358   :  { %v1352_v9 = vclz %v2854_v50  ;;  %v1418_v48 = vshrl.u32 %v4474_v18, %v1403_v55  ;;  %vm1420_vm1 = vcmp.lt.s32.totalorder %v1401_v8, 1  ;;  %vm1423_vm14 = vcmp.lt.s32.totalorder %v1401_v8, 4 }
 0x359   :  { %v1404_v17 = vshrl.u32 %v4472_v37, %v1403_v55  ;;  %v1425_v11 = vsel %vm1423_vm14, %v1413_v34, 2102212464  ;;  %v1428_v2 = vsel %vm1420_vm1, %v1407_v28, %v1410_v43  ;;  %vm1421_vm15 = vcmp.lt.s32.totalorder %v1401_v8, 2 }
 0x35a   :  { %v2855_v61 = vadd.s32 4294967294, %v1352_v9  ;;  %v1419_v60 = vor.u32 %v1418_v48, %v1417_v33  ;;  %vm1422_vm2 = vcmp.lt.s32.totalorder %v1401_v8, 3  ;;  %v1429_v57 = vsel %vm1423_vm14, %v1416_v54, 920167782 }
 0x35b   :  { %v1424_v24 = vsel %vm1420_vm1, %v1404_v17, %v1407_v28  ;;  %v1430_v51 = vsel %vm1422_vm2, %v1413_v34, %v1429_v57  ;;  %v1432_v45 = vsel %vm1420_vm1, %v1410_v43, %v1413_v34  ;;  %v1426_v18 = vsel %vm1422_vm2, %v1410_v43, %v1425_v11 }
 0x35c   :  { %vm2856_vm3 = vcmp.lt.s32.totalorder %v2855_v61, 0  ;;  %v1431_v46 = vsel %vm1421_vm15, %v1428_v2, %v1430_v51  ;;  %v1433_v22 = vsel %vm1423_vm14, %v1419_v60, 1326507024  ;;  %v1692_v48 = vsel %vm1690_vm13, %v4036_v26, %v861_v16 }
 0x35d   :  { %v4060_v58 = vsel %vm2856_vm3, 0, %v2855_v61  ;;  %v1434_v55 = vsel %vm1422_vm2, %v1416_v54, %v1433_v22  ;;  %vm1693_vm4 = vcmp.eq.s32.totalorder %v1688_v3, 2  ;;  %v1427_v43 = vsel %vm1421_vm15, %v1424_v24, %v1426_v18 }
 0x35e   :  { %v1360_v37 = vsub.s32 4294967266, %v4060_v58  ;;  %v1435_v27 = vsel %vm1421_vm15, %v1432_v45, %v1434_v55  ;;  %v4069_v28 = vmul.u32.u64.low %v4049_v62, %v1431_v46  ;;  %v4070_v7 = vmul.u32.u64.high %v4049_v62, %v1431_v46, %v4069_v28 }
 0x35f   :  { %v1695_v34 = vsel %vm1693_vm4, %v864_v0, %v4039_v15  ;;  %v4076_v50 = vmul.u32.u64.low %v4049_v62, %v1435_v27  ;;  %v4077_v9 = vmul.u32.u64.high %v4049_v62, %v1435_v27, %v4076_v50  ;;  %vm1689_vm5 = vcmp.lt.s32.totalorder %v1688_v3, 2 }
 0x360   :  { %v1236_v54 = vadd.s32 %v3899_v12, %v3905_v4  ;;  %v1696_v33 = vsel %vm1689_vm5, %v1692_v48, %v1695_v34  ;;  %v858_v61 = vand.u32 3, %v857_v56  ;;  %v4475_v17 = vshll.u32 %v3919_v40, %v3997_v36 }
 0x361   :  { %v1155_v2 = vor.u32 4788187, %v1154_v39  ;;  %v1252_v8 = vsub.s32 32, %v4019_v25  ;;  %v1697_v60 = vsel %vm856_vm6, nan, %v1696_v33  ;;  %v1258_v57 = vshll.u32 %v4053_v47, 23 }
 0x362   :  { %v1151_v11 = vor.u32 %v1150_v1, %v4475_v17  ;;  %v1361_v3 = vadd.s32 127, %v1360_v37  ;;  %v1443_v24 = vmul.u32 %v4049_v62, %v1427_v43  ;;  %v1446_v12 = vadd.s32 1, %v4070_v7  ;;  %2444 = vmatprep.mubr.f32.mxu1 %v1697_v60 }
 0x363   :  { %v1356_v4 = vsub.s32 32, %v4060_v58  ;;  %vm1445_vm7 = vc.u32 %v4077_v9, %v4069_v28  ;;  %vm860_vm8 = vcmp.eq.s32.totalorder %v858_v61, 0  ;;  %vm863_vm9 = vcmp.eq.s32.totalorder %v858_v61, 2 }
 0x364   :  { %v1447_v40 = vsel %vm1445_vm7, %v1446_v12, %v4070_v7  ;;  %vm859_vm10 = vcmp.lt.s32.totalorder %v858_v61, 2  ;;  %v862_v36 = vsel %vm860_vm8, %v4036_v26, %v861_v16  ;;  %v865_v39 = vsel %vm863_vm9, %v864_v0, %v4039_v15 }
 0x365   :  { %v4476_v1 = vsub.s32 4294967266, %v4000_v42  ;;  %v1156_v47 = vand.u32 2147483647, %v1155_v2  ;;  %v1448_v56 = vadd.s32 %v1447_v40, %v1443_v24  ;;  %v866_v51 = vsel %vm859_vm10, %v862_v36, %v865_v39 }
 0x366   :  { %v1254_v45 = vshrl.u32 %v1236_v54, %v1252_v8  ;;  %v1340_v18 = vadd.s32 %v3976_v19, %v3982_v49  ;;  %v1362_v46 = vshll.u32 %v1361_v3, 23  ;;  %v867_v22 = vsel %vm856_vm6, nan, %v866_v51 }
 0x367   :  { %v737_v62 = vadd.s32 127, %v4476_v1  ;;  %v732_v37 = vsub.s32 32, %v4000_v42  ;;  %v936_v16 = vclz %v4017_v38  ;;  %v4477_v26 = vclz %v4007_v32  ;;  %2519 = vmatprep.mubr.f32.mxu0 %v867_v22 }
 0x368   :  { %v1449_v0 = vadd.s32 536870912, %v1448_v56  ;;  %v1158_v55 = vcvt.s32.f32 %v1151_v11  ;;  %v1253_v48 = vshll.u32 %v3957_v30, %v4019_v25  ;;  %v1259_v27 = vor.u32 4788187, %v1258_v57 }
 0x369   :  { %v2843_v15 = vadd.s32 4294967294, %v4477_v26  ;;  %v1358_v7 = vshrl.u32 %v1340_v18, %v1356_v4  ;;  %v716_v49 = vadd.s32 %v3625_v10, %v3630_v14  ;;  %v738_v31 = vshll.u32 %v737_v62, 23 }
 0x36a   :  { %v4111_v19 = vshrl.u32 %v1449_v0, 30  ;;  %v1159_v34 = vmul.f32 %v1158_v55, %v1156_v47  ;;  %v1255_v43 = vor.u32 %v1254_v45, %v1253_v48  ;;  %v1357_v32 = vshll.u32 %v4031_v52, %v4060_v58 }
 0x36b   :  { %v1363_v38 = vor.u32 4788187, %v1362_v46  ;;  %v734_v50 = vshrl.u32 %v716_v49, %v732_v37  ;;  %v2839_v33 = vadd.s32 4294967294, %v936_v16  ;;  %vm2844_vm11 = vcmp.lt.s32.totalorder %v2843_v15, 0 }
 0x36c   :  { %v1451_v54 = vshll.u32 %v4111_v19, 30  ;;  %v1260_v30 = vand.u32 2147483647, %v1259_v27  ;;  %v1359_v25 = vor.u32 %v1358_v7, %v1357_v32  ;;  %v733_v61 = vshll.u32 %v3693_v6, %v4000_v42 }
 0x36d   :  { %v739_v10 = vor.u32 4788187, %v738_v31  ;;  %v1160_v17 = vxor.u32 2147483648, %v1159_v34  ;;  %v1262_v11 = vcvt.s32.f32 %v1255_v43  ;;  %v1364_v2 = vand.u32 2147483647, %v1363_v38 }
 0x36e   :  { %v1452_v14 = vsub.s32 %v1448_v56, %v1451_v54  ;;  %v735_v8 = vor.u32 %v734_v50, %v733_v61  ;;  %v1043_v60 = vsel %vm2844_vm11, 0, %v2843_v15  ;;  %vm2840_vm12 = vcmp.lt.s32.totalorder %v2839_v33, 0 }
 0x36f   :  { %v1263_v52 = vmul.f32 %v1262_v11, %v1260_v30  ;;  %v1366_v58 = vcvt.s32.f32 %v1359_v25  ;;  %v740_v3 = vand.u32 2147483647, %v739_v10  ;;  %vm1078_vm13 = vcmp.lt.s32.totalorder %v3671_v5, 0 }
 0x370   :  { %v1454_v57 = vsub.s32 0, %v1452_v14  ;;  %v1048_v12 = vsub.s32 4294967266, %v1043_v60  ;;  %v1161_v4 = vsel %vm1078_vm13, %v1160_v17, %v1159_v34  ;;  %v742_v42 = vcvt.s32.f32 %v735_v8 }
 0x371   :  { %v1367_v6 = vmul.f32 %v1366_v58, %v1364_v2  ;;  %v4121_v40 = vsel %vm2840_vm12, 0, %v2839_v33  ;;  %v4478_v39 = vand.u32 2147483647, %v3671_v5  ;;  %v1264_v62 = vxor.u32 2147483648, %v1263_v52 }
 0x372   :  { %v2858_v24 = vmin.u32 %v1454_v57, %v1452_v14  ;;  %v743_v47 = vmul.f32 %v742_v42, %v740_v3  ;;  %vm1182_vm14 = vcmp.lt.s32.totalorder %v3699_v53, 0  ;;  %v944_v45 = vsub.s32 4294967266, %v4121_v40 }
 0x373   :  { %vm4125_vm1 = vcmp.le.f32.partialorder %v4478_v39, 0.7853982  ;;  %v1028_v18 = vadd.s32 %v3824_v13, %v3818_v20  ;;  %v1049_v46 = vadd.s32 127, %v1048_v12  ;;  %v1368_v22 = vxor.u32 2147483648, %v1367_v6 }
 0x374   :  { %v1456_v36 = vclz %v2858_v24  ;;  %v1164_v56 = vsel %vm4125_vm1, %v3671_v5, %v1161_v4  ;;  %v1044_v37 = vsub.s32 32, %v1043_v60  ;;  %v4481_v16 = vand.u32 2147483647, %v3699_v53 }
 0x375   :  { %vm1286_vm2 = vcmp.lt.s32.totalorder %v3843_v21, 0  ;;  %v1162_v15 = vsub.s32 4, %v3873_v35  ;;  %3119 = vcosq.f32 %v1164_v56  ;;  %v1265_v0 = vsel %vm1182_vm14, %v1264_v62, %v1263_v52 }
 0x376   :  { %v2859_v51 = vadd.s32 4294967294, %v1456_v36  ;;  %vm4138_vm15 = vcmp.le.f32.partialorder %v4481_v16, 0.7853982  ;;  %3121 = vsinq.f32 %v1164_v56  ;;  %v1444_v20 = vadd.s32 %v4069_v28, %v4077_v9 }
 0x377   :  { %v940_v27 = vsub.s32 32, %v4121_v40  ;;  %v945_v7 = vadd.s32 127, %v944_v45  ;;  %v1050_v49 = vshll.u32 %v1049_v46, 23  ;;  %v1369_v31 = vsel %vm1286_vm2, %v1368_v22, %v1367_v6  ;;  %v4491_v22 = vld [vmem:[#allocation25_spill] sm:$0xff] }
 0x378   :  { %vm2860_vm3 = vcmp.lt.s32.totalorder %v2859_v51, 0  ;;  %v1268_v34 = vsel %vm4138_vm15, %v3699_v53, %v1265_v0  ;;  %v924_v50 = vadd.s32 %v3712_v63, %v3801_v23  ;;  %v1046_v28 = vshrl.u32 %v1028_v18, %v1044_v37  ;;  %v4495_v0 = vld [vmem:[#allocation23_spill] sm:$0xff] }
 0x379   :  { %v1459_v55 = vsel %vm2860_vm3, 0, %v2859_v51  ;;  %v4484_v9 = vand.u32 2147483647, %v3843_v21  ;;  %v1163_v33 = vsel %vm1078_vm13, %v1162_v15, %v3873_v35  ;;  %v744_v10 = vxor.u32 2147483648, %v743_v47 }
 0x37a   :  { %v1460_v13 = vsub.s32 32, %v1459_v55  ;;  %v1464_v48 = vsub.s32 4294967266, %v1459_v55  ;;  %v1461_v43 = vshll.u32 %v1452_v14, %v1459_v55  ;;  %v1045_v63 = vshll.u32 %v3985_v41, %v1043_v60  ;;  %v4487_v41 = vld [vmem:[#allocation28_spill] sm:$0xff] }
 0x37b   :  { %vm4158_vm4 = vcmp.le.f32.partialorder %v4484_v9, 0.7853982  ;;  %v1051_v23 = vor.u32 4788187, %v1050_v49  ;;  %3123 = vcosq.f32 %v1268_v34  ;;  %v942_v14 = vshrl.u32 %v924_v50, %v940_v27 }
 0x37c   :  { %v1462_v32 = vshrl.u32 %v1444_v20, %v1460_v13  ;;  %v1465_v38 = vadd.s32 127, %v1464_v48  ;;  %v1372_v30 = vsel %vm4158_vm4, %v3843_v21, %v1369_v31  ;;  %v946_v17 = vshll.u32 %v945_v7, 23 }
 0x37d   :  { %3125 = vsinq.f32 %v1268_v34  ;;  %v1047_v2 = vor.u32 %v1046_v28, %v1045_v63  ;;  %v1165_v8 = vsel %vm4125_vm1, 0, %v1163_v33  ;;  %v1370_v35 = vsub.s32 4, %v4010_v59 }
 0x37e   :  { %v1463_v25 = vor.u32 %v1462_v32, %v1461_v43  ;;  %v1466_v61 = vshll.u32 %v1465_v38, 23  ;;  %3127 = vcosq.f32 %v1372_v30  ;;  %v1266_v57 = vsub.s32 4, %v3944_v44 }
 0x37f   :  { %3129 = vsinq.f32 %v1372_v30  ;;  %v1052_v3 = vand.u32 2147483647, %v1051_v23  ;;  %vm4457_vm5 = vcmp.lt.s32.totalorder %v3514_v29, 0  ;;  %v941_v60 = vshll.u32 %v4487_v41, %v4121_v40 }
 0x380   :  { %v1467_v11 = vor.u32 4788187, %v1466_v61  ;;  %v1470_v58 = vcvt.s32.f32 %v1463_v25  ;;  %v1169_v24 = vadd.s32 3, %v1165_v8  ;;  %v4488_v4 = vand.u32 2147483647, %v3514_v29 }
 0x381   :  { %v745_v42 = vsel %vm4457_vm5, %v744_v10, %v743_v47  ;;  %v1054_v36 = vcvt.s32.f32 %v1047_v2  ;;  %v1371_v39 = vsel %vm1286_vm2, %v1370_v35, %v4010_v59  ;;  %v943_v62 = vor.u32 %v942_v14, %v941_v60 }
 0x382   :  { %v1468_v52 = vand.u32 2147483647, %v1467_v11  ;;  %vm4178_vm6 = vcmp.le.f32.partialorder %v4488_v4, 0.7853982  ;;  %v3120_v1 = vpop.eup %3119  ;;  %v947_v56 = vor.u32 4788187, %v946_v17  ;;  %v1267_v40 = vsel %vm1182_vm14, %v1266_v57, %v3944_v44 }
 0x383   :  { %v3122_v45 = vpop.eup %3121  ;;  %v1055_v18 = vmul.f32 %v1054_v36, %v1052_v3  ;;  %v1997_v46 = vand.u32 3, %v1165_v8  ;;  %vm1390_vm7 = vcmp.lt.s32.totalorder %v4491_v22, 0  ;;  %v1474_v47 = vsub.s32 4, %v4111_v19 }
 0x384   :  { %v1471_v12 = vmul.f32 %v1470_v58, %v1468_v52  ;;  %v1170_v37 = vand.u32 3, %v1169_v24  ;;  %v1373_v16 = vsel %vm4158_vm4, 0, %v1371_v39  ;;  %v4492_v59 = vand.u32 2147483647, %v4491_v22 }
 0x385   :  { %vm4456_vm9 = vcmp.lt.s32.totalorder %v4495_v0, 0  ;;  %v1176_v55 = vxor.u32 2147483648, %v3120_v1  ;;  %v1269_v20 = vsel %vm4138_vm15, 0, %v1267_v40  ;;  %v4211_v48 = vsel %vm4178_vm6, %v3514_v29, %v745_v42 }
 0x386   :  { %v1472_v51 = vxor.u32 2147483648, %v1471_v12  ;;  %vm4196_vm8 = vcmp.le.f32.partialorder %v4492_v59, 0.7853982  ;;  %v948_v27 = vand.u32 2147483647, %v947_v56  ;;  %v1173_v7 = vxor.u32 2147483648, %v3122_v45 }
 0x387   :  { %v1056_v49 = vxor.u32 2147483648, %v1055_v18  ;;  %v1377_v31 = vadd.s32 3, %v1373_v16  ;;  %v1475_v34 = vsel %vm1390_vm7, %v1474_v47, %v4111_v19  ;;  %v950_v43 = vcvt.s32.f32 %v943_v62 }
 0x388   :  { %v1473_v44 = vsel %vm1390_vm7, %v1472_v51, %v1471_v12  ;;  %v3124_v26 = vpop.eup %3123  ;;  %vm1175_vm10 = vcmp.eq.s32.totalorder %v1170_v37, 2  ;;  %vm2002_vm11 = vcmp.eq.s32.totalorder %v1997_v46, 2  ;;  %v1273_v32 = vadd.s32 3, %v1269_v20 }
 0x389   :  { %v1476_v13 = vsel %vm4196_vm8, %v4491_v22, %v1473_v44  ;;  %vm1172_vm12 = vcmp.eq.s32.totalorder %v1170_v37, 0  ;;  %v1177_v50 = vsel %vm1175_vm10, %v1176_v55, %v3122_v45  ;;  %vm1999_vm13 = vcmp.eq.s32.totalorder %v1997_v46, 0  ;;  %v2331_v44 = vld [vmem:[#allocation13 + $0x78] sm:$0xff] }
 0x38a   :  { %3131 = vcosq.f32 %v1476_v13  ;;  %v3126_v38 = vpop.eup %3125  ;;  %v2004_v28 = vsel %vm2002_vm11, %v1176_v55, %v3122_v45  ;;  %v1174_v54 = vsel %vm1172_vm12, %v3120_v1, %v1173_v7  ;;  %v2001_v33 = vsel %vm1999_vm13, %v3120_v1, %v1173_v7 }
 0x38b   :  { %3133 = vsinq.f32 %v1476_v13  ;;  %v3128_v9 = vpop.eup %3127  ;;  %v2203_v30 = vand.u32 3, %v1373_v16  ;;  %v1477_v25 = vsel %vm4196_vm8, 0, %v1475_v34  ;;  %v4218_v19 = vmul.f32 %v950_v43, %v948_v27  ;;  %v2329_v43 = vld [vmem:[#allocation13 + $0x68] sm:$0xff] }
 0x38c   :  { %v3130_v61 = vpop.eup %3129  ;;  %v4222_v10 = vsel %vm4456_vm9, %v1056_v49, %v1055_v18  ;;  %v2100_v63 = vand.u32 3, %v1269_v20  ;;  %v1378_v23 = vand.u32 3, %v1377_v31  ;;  %vm1171_vm1 = vcmp.lt.s32.totalorder %v1170_v37, 2  ;;  %v2330_v49 = vld [vmem:[#allocation13 + $0x70] sm:$0xff] }
 0x38d   :  { %vm1998_vm14 = vcmp.lt.s32.totalorder %v1997_v46, 2  ;;  %v1274_v14 = vand.u32 3, %v1273_v32  ;;  %v1280_v17 = vxor.u32 2147483648, %v3124_v26  ;;  %v4224_v11 = vsel %vm1171_vm1, %v1174_v54, %v1177_v50 }
 0x38e   :  { %v4226_v2 = vsel %vm1998_vm14, %v2001_v33, %v2004_v28  ;;  %v1481_v8 = vadd.s32 3, %v1477_v25  ;;  %v1277_v35 = vxor.u32 2147483648, %v3126_v38  ;;  %v1381_v57 = vxor.u32 2147483648, %v3130_v61 }
 0x38f   :  { %v1384_v52 = vxor.u32 2147483648, %v3128_v9  ;;  %vm2205_vm15 = vcmp.eq.s32.totalorder %v2203_v30, 0  ;;  %vm2208_vm2 = vcmp.eq.s32.totalorder %v2203_v30, 2  ;;  %vm1376_vm3 = vweird.f32 %v3843_v21 }
 0x390   :  { %vm1380_vm4 = vcmp.eq.s32.totalorder %v1378_v23, 0  ;;  %vm1383_vm7 = vcmp.eq.s32.totalorder %v1378_v23, 2  ;;  %vm2102_vm8 = vcmp.eq.s32.totalorder %v2100_v63, 0  ;;  %vm2105_vm10 = vcmp.eq.s32.totalorder %v2100_v63, 2 }
 0x391   :  { %vm1272_vm11 = vweird.f32 %v3699_v53  ;;  %vm1480_vm12 = vweird.f32 %v4491_v22  ;;  %v2306_v58 = vand.u32 3, %v1477_v25  ;;  %v2107_v3 = vsel %vm2105_vm10, %v1280_v17, %v3126_v38  ;;  %v2328_v25 = vld [vmem:[#allocation13 + $0x60] sm:$0xff] }
 0x392   :  { %vm1276_vm13 = vcmp.eq.s32.totalorder %v1274_v14, 0  ;;  %vm1279_vm1 = vcmp.eq.s32.totalorder %v1274_v14, 2  ;;  %v1482_v41 = vand.u32 3, %v1481_v8  ;;  %v2104_v60 = vsel %vm2102_vm8, %v3124_v26, %v1277_v35 }
 0x393   :  { %v1278_v24 = vsel %vm1276_vm13, %v3124_v26, %v1277_v35  ;;  %v1281_v12 = vsel %vm1279_vm1, %v1280_v17, %v3126_v38  ;;  %v4496_v4 = vand.u32 2147483647, %v4495_v0  ;;  %v1382_v36 = vsel %vm1380_vm4, %v3128_v9, %v1381_v57  ;;  %v2326_v35 = vld [vmem:[#allocation13 + $0x50] sm:$0xff] }
 0x394   :  { %v1385_v39 = vsel %vm1383_vm7, %v1384_v52, %v3130_v61  ;;  %v2207_v1 = vsel %vm2205_vm15, %v3128_v9, %v1381_v57  ;;  %v2210_v62 = vsel %vm2208_vm2, %v1384_v52, %v3130_v61  ;;  %vm1379_vm10 = vcmp.lt.s32.totalorder %v1378_v23, 2  ;;  %v4499_v61 = vld [vmem:[#allocation24_spill] sm:$0xff]  ;;  %v2325_v52 = vld [vmem:[#allocation13 + $0x48] sm:$0xff] }
 0x395   :  { %vm4233_vm14 = vcmp.le.f32.partialorder %v4496_v4, 0.7853982  ;;  %vm2204_vm0 = vcmp.lt.s32.totalorder %v2203_v30, 2  ;;  %vm2101_vm9 = vcmp.lt.s32.totalorder %v2100_v63, 2  ;;  %vm1275_vm5 = vcmp.lt.s32.totalorder %v1274_v14, 2  ;;  %v2327_v63 = vld [vmem:[#allocation13 + $0x58] sm:$0xff] }
 0x396   :  { %vm2311_vm8 = vcmp.eq.s32.totalorder %v2306_v58, 2  ;;  %v2108_v45 = vsel %vm2101_vm9, %v2104_v60, %v2107_v3  ;;  %v1282_v18 = vsel %vm1275_vm5, %v1278_v24, %v1281_v12  ;;  %v1386_v46 = vsel %vm1379_vm10, %v1382_v36, %v1385_v39  ;;  %v2324_v36 = vld [vmem:[#allocation13 + $0x40] sm:$0xff]  ;;  %v2323_v39 = vld [vmem:[#allocation13 + $0x38] sm:$0xff] }
 0x397   :  { %v3132_v56 = vpop.eup %3131  ;;  %v2211_v47 = vsel %vm2204_vm0, %v2207_v1, %v2210_v62  ;;  %vm1487_vm13 = vcmp.eq.s32.totalorder %v1482_v41, 2  ;;  %vm2308_vm4 = vcmp.eq.s32.totalorder %v2306_v58, 0  ;;  %vm1484_vm7 = vcmp.eq.s32.totalorder %v1482_v41, 0  ;;  %v4506_v1 = vld [vmem:[#allocation27_spill] sm:$0xff] }
 0x398   :  { %v3134_v40 = vpop.eup %3133  ;;  %v1488_v51 = vxor.u32 2147483648, %v3132_v56  ;;  %vm2307_vm15 = vcmp.lt.s32.totalorder %v2306_v58, 2  ;;  %vm1483_vm2 = vcmp.lt.s32.totalorder %v1482_v41, 2  ;;  %v4241_v20 = vsel %vm1376_vm3, nan, %v1386_v46  ;;  %v4505_v58 = vld [vmem:[#allocation26_spill] sm:$0xff] }
 0x399   :  { %v1485_v37 = vxor.u32 2147483648, %v3134_v40  ;;  %v4245_v13 = vsel %vm1376_vm3, nan, %v2211_v47  ;;  %v4257_v26 = vsel %vm1272_vm11, nan, %v2108_v45  ;;  %v4261_v21 = vsel %vm1272_vm11, nan, %v1282_v18 }
 0x39a   :  { %v2313_v16 = vsel %vm2311_vm8, %v1488_v51, %v3134_v40  ;;  %v1489_v59 = vsel %vm1487_vm13, %v1488_v51, %v3134_v40  ;;  %3135 = vcosq.f32 %v4211_v48  ;;  %v952_v32 = vxor.u32 2147483648, %v4218_v19  ;;  %v2818_v40 = vld [vmem:[#allocation10 + $0x2] ss:$0 sm:$0xff] }
 0x39b   :  { %v2310_v15 = vsel %vm2308_vm4, %v3132_v56, %v1485_v37  ;;  %v1486_v55 = vsel %vm1484_vm7, %v3132_v56, %v1485_v37  ;;  %v1060_v22 = vsel %vm4233_vm14, %v4495_v0, %v4222_v10  ;;  %vm1168_vm0 = vweird.f32 %v3671_v5  ;;  %v4500_v5 = vld [vmem:[#allocation22_spill] sm:$0xff]  ;;  %v2322_v37 = vld [vmem:[#allocation13 + $0x30] sm:$0xff] }
 0x39c   :  { %v2314_v27 = vsel %vm2307_vm15, %v2310_v15, %v2313_v16  ;;  %v1490_v7 = vsel %vm1483_vm2, %v1486_v55, %v1489_v59  ;;  %v2362_v28 = vmul.f32 %v2330_v49, %v4245_v13  ;;  %v2346_v53 = vmul.f32 %v2330_v49, %v4241_v20  ;;  %v2321_v16 = vld [vmem:[#allocation13 + $0x28] sm:$0xff]  ;;  %v2320_v59 = vld [vmem:[#allocation13 + $0x20] sm:$0xff]  ;;  %v4508_v55 = vld [vmem:[#allocation20_spill] sm:$0xff] }
 0x39d   :  { %v4249_v31 = vsel %vm1480_vm12, nan, %v2314_v27  ;;  %v4253_v34 = vsel %vm1480_vm12, nan, %v1490_v7  ;;  %v4275_v9 = vsel %vm1168_vm0, nan, %v4224_v11  ;;  %v4278_v54 = vsel %vm1168_vm0, nan, %v4226_v2  ;;  %v4509_v7 = vld [vmem:[#allocation21_spill] sm:$0xff] }
 0x39e   :  { %v2363_v38 = vmul.f32 %v2331_v44, %v4249_v31  ;;  %v2347_v50 = vmul.f32 %v2331_v44, %v4253_v34  ;;  %v2361_v33 = vmul.f32 %v2329_v43, %v4257_v26  ;;  %v2345_v30 = vmul.f32 %v2329_v43, %v4261_v21 }
 0x39f   :  { %v746_v10 = vsub.s32 4, %v4499_v61  ;;  %3137 = vsinq.f32 %v4211_v48  ;;  %vm870_vm5 = vcmp.lt.s32.totalorder %v4500_v5, 0  ;;  %v2360_v14 = vmul.f32 %v2328_v25, %v4278_v54 }
 0x3a0   :  { %2396 = vmatprep.subr.mxu1 %v2363_v38  ;;  %2471 = vmatprep.subr.mxu0 %v2347_v50  ;;  %v953_v23 = vsel %vm870_vm5, %v952_v32, %v4218_v19  ;;  %3139 = vcosq.f32 %v1060_v22  ;;  %v2344_v17 = vmul.f32 %v2328_v25, %v4275_v9  ;;  %v4501_v11 = vand.u32 2147483647, %v4500_v5 }
 0x3a1   :  { %2397 = vmatpush1.xpose.msra.mxu1 %v2362_v28  ;;  %2472 = vmatpush1.xpose.msra.mxu0 %v2346_v53  ;;  %3141 = vsinq.f32 %v1060_v22  ;;  %v2359_v2 = vmul.f32 %v2327_v63, %v4249_v31  ;;  %v2343_v8 = vmul.f32 %v2327_v63, %v4253_v34  ;;  %vm4504_vm3 = vcmp.lt.s32.totalorder %v3514_v29, 0  ;;  %v2317_v28 = vld [vmem:[#allocation13 + $0x8] sm:$0xff]  ;;  %v2316_v53 = vld [vmem:[#allocation13] sm:$0xff] }
 0x3a2   :  { %2398 = vmatprep.subr.mxu1 %v2361_v33  ;;  %2473 = vmatprep.subr.mxu0 %v2345_v30  ;;  %vm4292_vm9 = vcmp.le.f32.partialorder %v4501_v11, 0.7853982  ;;  %v747_v19 = vsel %vm4504_vm3, %v746_v10, %v4499_v61  ;;  %v1058_v3 = vsub.s32 4, %v4505_v58  ;;  %v2358_v41 = vmul.f32 %v2326_v35, %v4245_v13 }
 0x3a3   :  { %v956_v57 = vsel %vm4292_vm9, %v4500_v5, %v953_v23  ;;  %v2342_v60 = vmul.f32 %v2326_v35, %v4241_v20  ;;  %v749_v24 = vsel %vm4178_vm6, 0, %v747_v19  ;;  %v2357_v12 = vmul.f32 %v2325_v52, %v4257_v26  ;;  %v2319_v23 = vld [vmem:[#allocation13 + $0x18] sm:$0xff] }
 0x3a4   :  { %3143 = vsinq.f32 %v956_v57  ;;  %v2341_v4 = vmul.f32 %v2325_v52, %v4261_v21  ;;  %v954_v62 = vsub.s32 4, %v4506_v1  ;;  %vm4507_vm11 = vcmp.lt.s32.totalorder %v4495_v0, 0 }
 0x3a5   :  { %2399 = vmatpush1.xpose.msra.mxu1 %v2360_v14  ;;  %2474 = vmatpush1.xpose.msra.mxu0 %v2344_v17  ;;  %3145 = vcosq.f32 %v956_v57  ;;  %v1059_v56 = vsel %vm4507_vm11, %v1058_v3, %v4505_v58  ;;  %v753_v51 = vadd.s32 3, %v749_v24  ;;  %v2356_v45 = vmul.f32 %v2324_v36, %v4278_v54  ;;  %v2318_v3 = vld [vmem:[#allocation13 + $0x10] sm:$0xff] }
 0x3a6   :  { %2400 = vmatprep.subr.mxu1 %v2359_v2  ;;  %2475 = vmatprep.subr.mxu0 %v2343_v8  ;;  %v2340_v18 = vmul.f32 %v2324_v36, %v4275_v9  ;;  %v2355_v46 = vmul.f32 %v2323_v39, %v4249_v31  ;;  %v2339_v47 = vmul.f32 %v2323_v39, %v4253_v34  ;;  %v1061_v15 = vsel %vm4233_vm14, 0, %v1059_v56  ;;  %v2371_v36 = vld [vmem:[%s4421_s9 + $0x38] sm:$0xff] }
 0x3a7   :  { %v4315_v6 = vpop.eup %3135  ;;  %v4324_v27 = vadd.f32 %v4508_v55, %v2818_v40  ;;  %v4327_v49 = vadd.f32 %v2818_v40, %v4509_v7  ;;  %v955_v43 = vsel %vm870_vm5, %v954_v62, %v4506_v1  ;;  %v4332_v38 = vand.u32 3, %v753_v51 }
 0x3a8   :  { %v4334_v50 = vand.u32 3, %v749_v24  ;;  %v2354_v42 = vmul.f32 %v2322_v37, %v4245_v13  ;;  %v2338_v22 = vmul.f32 %v2322_v37, %v4241_v20  ;;  %v2353_v30 = vmul.f32 %v2321_v16, %v4257_v26 }
 0x3a9   :  { %2401 = vmatpush1.xpose.msra.mxu1 %v2358_v41  ;;  %2476 = vmatpush1.xpose.msra.mxu0 %v2342_v60  ;;  %v2337_v25 = vmul.f32 %v2321_v16, %v4261_v21  ;;  %v2352_v61 = vmul.f32 %v2320_v59, %v4278_v54  ;;  %v1065_v10 = vadd.s32 3, %v1061_v15  ;;  %v2336_v63 = vmul.f32 %v2320_v59, %v4275_v9  ;;  %v2370_v59 = vld [vmem:[%s4421_s9 + $0x30] sm:$0xff] }
 0x3aa   :  { %2402 = vmatprep.subr.mxu1 %v2357_v12  ;;  %2477 = vmatprep.subr.mxu0 %v2341_v4  ;;  %v760_v17 = vxor.u32 2147483648, %v4315_v6  ;;  %v957_v11 = vsel %vm4292_vm9, 0, %v955_v43  ;;  %v2349_v2 = vmul.f32 %v2317_v28, %v4257_v26  ;;  %v2333_v8 = vmul.f32 %v2317_v28, %v4261_v21 }
 0x3ab   :  { %v2348_v35 = vmul.f32 %v2316_v53, %v4278_v54  ;;  %v1894_v19 = vand.u32 3, %v1061_v15  ;;  %vm1587_vm6 = vcmp.eq.s32.totalorder %v4334_v50, 0  ;;  %vm1590_vm12 = vcmp.eq.s32.totalorder %v4334_v50, 2 }
 0x3ac   :  { %v3138_v44 = vpop.eup %3137  ;;  %v2351_v58 = vmul.f32 %v2319_v23, %v4249_v31  ;;  %v2335_v48 = vmul.f32 %v2319_v23, %v4253_v34  ;;  %v1066_v41 = vand.u32 3, %v1065_v10  ;;  %v961_v60 = vadd.s32 3, %v957_v11 }
 0x3ad   :  { %2403 = vmatpush1.xpose.msra.mxu1 %v2356_v45  ;;  %2478 = vmatpush1.xpose.msra.mxu0 %v2340_v18  ;;  %v3140_v32 = vpop.eup %3139  ;;  %v757_v14 = vxor.u32 2147483648, %v3138_v44  ;;  %v1592_v21 = vsel %vm1590_vm12, %v760_v17, %v3138_v44  ;;  %vm756_vm1 = vcmp.eq.s32.totalorder %v4332_v38, 0  ;;  %vm759_vm14 = vcmp.eq.s32.totalorder %v4332_v38, 2 }
 0x3ae   :  { %2404 = vmatprep.subr.mxu1 %v2355_v46  ;;  %2479 = vmatprep.subr.mxu0 %v2339_v47  ;;  %v3142_v33 = vpop.eup %3141  ;;  %v1072_v52 = vxor.u32 2147483648, %v3140_v32  ;;  %v761_v12 = vsel %vm759_vm14, %v760_v17, %v3138_v44  ;;  %vm1896_vm10 = vcmp.eq.s32.totalorder %v1894_v19, 0  ;;  %vm1899_vm8 = vcmp.eq.s32.totalorder %v1894_v19, 2 }
 0x3af   :  { %v1069_v57 = vxor.u32 2147483648, %v3142_v33  ;;  %v1589_v26 = vsel %vm1587_vm6, %v4315_v6, %v757_v14  ;;  %v758_v31 = vsel %vm756_vm1, %v4315_v6, %v757_v14  ;;  %v2350_v34 = vmul.f32 %v2318_v3, %v4245_v13 }
 0x3b0   :  { %v2334_v4 = vmul.f32 %v2318_v3, %v4241_v20  ;;  %v1901_v1 = vsel %vm1899_vm8, %v1072_v52, %v3142_v33  ;;  %vm1068_vm13 = vcmp.eq.s32.totalorder %v1066_v41, 0  ;;  %vm1071_vm4 = vcmp.eq.s32.totalorder %v1066_v41, 2 }
 0x3b1   :  { %2405 = vmatpush1.xpose.msra.mxu1 %v2354_v42  ;;  %2480 = vmatpush1.xpose.msra.mxu0 %v2338_v22  ;;  %v3144_v24 = vpop.eup %3143  ;;  %v1898_v39 = vsel %vm1896_vm10, %v3140_v32, %v1069_v57  ;;  %v962_v56 = vand.u32 3, %v961_v60  ;;  %v1070_v6 = vsel %vm1068_vm13, %v3140_v32, %v1069_v57  ;;  %v1073_v40 = vsel %vm1071_vm4, %v1072_v52, %v3142_v33  ;;  %v2367_v33 = vld [vmem:[%s4421_s9 + $0x18] sm:$0xff]  ;;  %v2531_v52 = vld [vmem:[%s4422_s10 + $0x8] sm:$0xff] }
 0x3b2   :  { %2406 = vmatprep.subr.mxu1 %v2353_v30  ;;  %2481 = vmatprep.subr.mxu0 %v2337_v25  ;;  %v3146_v54 = vpop.eup %3145  ;;  %v965_v62 = vxor.u32 2147483648, %v3144_v24  ;;  %v1791_v45 = vand.u32 3, %v957_v11  ;;  %v2332_v20 = vmul.f32 %v2316_v53, %v4275_v9  ;;  %v2379_v13 = vmul.f32 %v2371_v36, %v4324_v27  ;;  %v2366_v30 = vld [vmem:[%s4421_s9 + $0x10] sm:$0xff]  ;;  %v2704_v60 = vld [vmem:[#allocation8 + $0x18] sm:$0xff] }
 0x3b3   :  { %v968_v51 = vxor.u32 2147483648, %v3146_v54  ;;  %vm1586_vm7 = vcmp.lt.s32.totalorder %v4334_v50, 2  ;;  %vm755_vm15 = vcmp.lt.s32.totalorder %v4332_v38, 2  ;;  %vm1895_vm2 = vcmp.lt.s32.totalorder %v1894_v19, 2 }
 0x3b4   :  { %v1593_v18 = vsel %vm1586_vm7, %v1589_v26, %v1592_v21  ;;  %v762_v46 = vsel %vm755_vm15, %v758_v31, %v761_v12  ;;  %vm1067_vm0 = vcmp.lt.s32.totalorder %v1066_v41, 2  ;;  %v1902_v47 = vsel %vm1895_vm2, %v1898_v39, %v1901_v1  ;;  %v2702_v26 = vld [vmem:[#allocation8 + $0x8] sm:$0xff]  ;;  %v2701_v21 = vld [vmem:[#allocation8] sm:$0xff] }
 0x3b5   :  { %2407 = vmatpush1.xpose.msra.mxu1 %v2352_v61  ;;  %2482 = vmatpush1.xpose.msra.mxu0 %v2336_v63  ;;  %v1074_v37 = vsel %vm1067_vm0, %v1070_v6, %v1073_v40  ;;  %vm964_vm5 = vcmp.eq.s32.totalorder %v962_v56, 0  ;;  %vm967_vm9 = vcmp.eq.s32.totalorder %v962_v56, 2  ;;  %vm1793_vm3 = vcmp.eq.s32.totalorder %v1791_v45, 0  ;;  %v2365_v61 = vld [vmem:[%s4421_s9 + $0x8] sm:$0xff]  ;;  %v2364_v63 = vld [vmem:[%s4421_s9] sm:$0xff] }
 0x3b6   :  { %2408 = vmatprep.subr.mxu1 %v2351_v58  ;;  %2483 = vmatprep.subr.mxu0 %v2335_v48  ;;  %vm1796_vm11 = vcmp.eq.s32.totalorder %v1791_v45, 2  ;;  %v966_v16 = vsel %vm964_vm5, %v3146_v54, %v965_v62  ;;  %v969_v9 = vsel %vm967_vm9, %v968_v51, %v3144_v24  ;;  %vm752_vm6 = vweird.f32 %v3514_v29  ;;  %v2369_v29 = vld [vmem:[%s4421_s9 + $0x28] sm:$0xff] }
 0x3b7   :  { %v1795_v15 = vsel %vm1793_vm3, %v3146_v54, %v965_v62  ;;  %v1798_v44 = vsel %vm1796_vm11, %v968_v51, %v3144_v24  ;;  %v1594_v55 = vsel %vm752_vm6, nan, %v1593_v18  ;;  %v763_v7 = vsel %vm752_vm6, nan, %v762_v46  ;;  %v2703_v24 = vld [vmem:[#allocation8 + $0x10] sm:$0xff] }
 0x3b8   :  { %vm1064_vm12 = vweird.f32 %v4495_v0  ;;  %vm963_vm1 = vcmp.lt.s32.totalorder %v962_v56, 2  ;;  %vm1792_vm14 = vcmp.lt.s32.totalorder %v1791_v45, 2  ;;  %v2378_v50 = vmul.f32 %v2370_v59, %v4327_v49  ;;  %v2368_v0 = vld [vmem:[%s4421_s9 + $0x20] sm:$0xff] }
 0x3b9   :  { %2409 = vmatpush1.xpose.msra.mxu1 %v2350_v34  ;;  %2484 = vmatpush1.xpose.msra.mxu0 %v2334_v4  ;;  %v1903_v43 = vsel %vm1064_vm12, nan, %v1902_v47  ;;  %v1075_v32 = vsel %vm1064_vm12, nan, %v1074_v37  ;;  %v970_v38 = vsel %vm963_vm1, %v966_v16, %v969_v9  ;;  %v1799_v42 = vsel %vm1792_vm14, %v1795_v15, %v1798_v44 }
 0x3ba   :  { %2410 = vmatprep.subr.mxu1 %v2349_v2  ;;  %2485 = vmatprep.subr.mxu0 %v2333_v8  ;;  %vm960_vm10 = vweird.f32 %v4500_v5  ;;  %v2377_v28 = vmul.f32 %v2369_v29, %v4324_v27  ;;  %v2376_v5 = vmul.f32 %v2368_v0, %v4327_v49  ;;  %v2375_v25 = vmul.f32 %v2367_v33, %v4324_v27 }
 0x3bb   :  { %v971_v22 = vsel %vm960_vm10, nan, %v970_v38  ;;  %v1800_v53 = vsel %vm960_vm10, nan, %v1799_v42  ;;  %v2374_v10 = vmul.f32 %v2366_v30, %v4327_v49  ;;  %v2373_v23 = vmul.f32 %v2365_v61, %v4324_v27  ;;  %v2530_v27 = vld [vmem:[%s4422_s10] sm:$0xff]  ;;  %s3339_s10 = smov [#allocation14]  }
 0x3bc   :  { %v2372_v14 = vmul.f32 %v2364_v63, %v4327_v49  ;;  %vm2534_vm8 = vcmask 523264   ;;  %vm4510_vm13 = vcmask 261120   ;;  %s2797_s27 = sshll.u32 %s3339_s10, 4  ;;  %s2798_s27 = int_to_ptr.vmem [resolvable:$true] %s2797_s27 }
 0x3bd   :  { %2411 = vmatpush1.xpose.msra.mxu1 %v2348_v35  ;;  %2486 = vmatpush1.xpose.msra.mxu0 %v2332_v20  ;;  %vm4511_vm4 = vmmov %vm4510_vm13  ;;  %v2897_v20 = vld [vmem:[#allocation10 + $0x3] ss:$0 sm:$0xff]  ;;  %s3291_s28 = scalar_lea.vmem %s2798_s27, 256  ;;  %p3296_p8 = scmp.lt.s32.totalorder %s2798_s27, %s2798_s27 }
 0x3be   :  { %2999 = vmatprep.subr.mxu1 %v2379_v13  ;;  %3018 = vmatprep.subr.mxu0 %v2371_v36  ;;  %vm4512_vm7 = vmmov %vm4511_vm4  ;;  %p3292_p7 = scmp.ne.s32.totalorder %s2798_s27, %s3291_s28  ;;  %p3297_p9 = scmp.lt.s32.totalorder %s3291_s28, %s3291_s28 }
 0x3bf   :  { %vm4513_vm15 = vmmov %vm4511_vm4 }
 0x3c0   :  { %2445 = vmatmul.mubr.f32.vlgmr.msra.gmra.mxu1 %v1594_v55  ;;  %2520 = vmatmul.mubr.f32.vlgmr.msra.gmra.mxu0 %v763_v7  ;;  %p3298_p10 = por %p3297_p9, %p3296_p8 }
 0x3c1   :  { %2449 = vmatprep.mubr.f32.mxu1 %v1903_v43  ;;  %2524 = vmatprep.mubr.f32.mxu0 %v1075_v32 }
 0x3c2   :  { %3000 = vmatpush3.msra.mxu1 %v2379_v13  ;;  %3019 = vmatpush3.msra.mxu0 %v2371_v36  ;;  %p3299_p11 = pnand %p3298_p10, %p3292_p7 }
 0x3c3   :  { %3001 = vmatprep.subr.mxu1 %v2378_v50  ;;  %3020 = vmatprep.subr.mxu0 %v2370_v59 }
 0x3c4   :  { %3002 = vmatpush3.msra.mxu1 %v2378_v50  ;;  %2525 = vmatmul.mubr.f32.gmra.mxu0 %v971_v22 }
 0x3c5   :  { %2450 = vmatmul.mubr.f32.gmra.mxu1 %v1800_v53  ;;  %3003 = vmatprep.subr.mxu1 %v2377_v28 }
 0x3c6   :  { %3004 = vmatpush3.msra.mxu1 %v2377_v28  ;;  %3021 = vmatpush3.msra.mxu0 %v2370_v59 }
 0x3c7   :  { %3005 = vmatprep.subr.mxu1 %v2376_v5  ;;  %3022 = vmatprep.subr.mxu0 %v2369_v29 }
 0x3c8   :  { %3006 = vmatpush3.msra.mxu1 %v2376_v5  ;;  %3023 = vmatpush3.msra.mxu0 %v2369_v29 }
 0x3c9   :  { %3007 = vmatprep.subr.mxu1 %v2375_v25  ;;  %3024 = vmatprep.subr.mxu0 %v2368_v0 }
 0x3ca   :  { %3008 = vmatpush3.msra.mxu1 %v2375_v25  ;;  %3025 = vmatpush3.msra.mxu0 %v2368_v0 }
 0x3cb   :  { %3009 = vmatprep.subr.mxu1 %v2374_v10  ;;  %3026 = vmatprep.subr.mxu0 %v2367_v33 }
 0x3cc   :  { %3010 = vmatpush3.msra.mxu1 %v2374_v10  ;;  %3027 = vmatpush3.msra.mxu0 %v2367_v33 }
 0x3cd   :  { %3011 = vmatprep.subr.mxu1 %v2373_v23  ;;  %3028 = vmatprep.subr.mxu0 %v2366_v30 }
 0x3ce   :  { %3012 = vmatpush3.msra.mxu1 %v2373_v23  ;;  %3029 = vmatpush3.msra.mxu0 %v2366_v30 }
 0x3cf   :  { %3013 = vmatprep.subr.mxu1 %v2372_v14  ;;  %3030 = vmatprep.subr.mxu0 %v2365_v61 }
 0x3d0   :  { %3014 = vmatpush3.msra.mxu1 %v2372_v14  ;;  %3031 = vmatpush3.msra.mxu0 %v2365_v61 }
 0x3d1   :  { %3032 = vmatprep.subr.mxu0 %v2364_v63  ;;  %3037 = vmatprep.subr.mxu1 %v2704_v60 }
 0x3d2   :  { %3033 = vmatpush3.msra.mxu0 %v2364_v63 }
 0x480   :  { %v2446_v17 = vpop.f32.mrf.mxu1  ;;  %v2521_v11 = vpop.f32.mrf.mxu0 }
 0x481   :  { %v2522_v2 = vadd.f32 %v2521_v11, %v2446_v17 }
 0x482   :  { %v2448_v8 = vpop.f32.mrf.mxu1  ;;  %v2523_v35 = vpop.f32.mrf.mxu0 }
 0x483   :  { %v2532_v49 = vmul.f32 %v2530_v27, %v2522_v2 }
 0x484   :  { %v2526_v19 = vpop.f32.mrf.mxu0 }
 0x485   :  { %v2451_v57 = vpop.f32.mrf.mxu1  ;;  %3015 = vmatprep.mubr.msk.f32.mxu1 %vm2534_vm8, %v2532_v49  ;;  %3034 = vmatprep.mubr.msk.f32.mxu0 %vm2534_vm8, %v2532_v49 }
 0x486   :  { %v2527_v58 = vadd.f32 %v2526_v19, %v2451_v57  ;;  %v2528_v48 = vpop.f32.mrf.mxu0 }
 0x487   :  { %v2453_v3 = vpop.f32.mrf.mxu1 }
 0x488   :  { %v2533_v41 = vmul.f32 %v2531_v52, %v2527_v58 }
 0x48a   :  { %3016 = vmatmul.mubr.msk.f32.vlgmr.msra.gmra.mxu1 %vm2534_vm8, %v2533_v41  ;;  %3035 = vmatmul.mubr.msk.f32.vlgmr.msra.gmra.mxu0 %vm2534_vm8, %v2533_v41 }
 0x48b   :  { %3038 = vmatpush3.msra.mxu1 %v2704_v60 }
 0x48c   :  { %3039 = vmatprep.subr.mxu1 %v2703_v24 }
 0x48d   :  { %3040 = vmatpush3.msra.mxu1 %v2703_v24 }
 0x48e   :  { %3041 = vmatprep.subr.mxu1 %v2702_v26 }
 0x48f   :  { %3042 = vmatpush3.msra.mxu1 %v2702_v26 }
 0x490   :  { %3043 = vmatprep.subr.mxu1 %v2701_v21 }
 0x491   :  { %3044 = vmatpush3.msra.mxu1 %v2701_v21 }
 0x54a   :  { %v3036_v54 = vpop.f32.mrf.mxu0  ;;  %v3017_v1 = vpop.f32.mrf.mxu1 }
 0x54b   :  { %3147 = vrcp.f32 %v3036_v54 }
 0x54c   :  { %v2682_v31 = vpop.f32.mrf.mxu0  ;;  %v2607_v40 = vpop.f32.mrf.mxu1 }
 0x54d   :  { %3149 = vrcp.f32 %v2682_v31 }
 0x558   :  { %v3148_v12 = vpop.eup %3147 }
 0x559   :  { %v2694_v34 = vmul.f32 %v3148_v12, %v3036_v54 }
 0x55a   :  { %v3150_v4 = vpop.eup %3149 }
 0x55b   :  { %v2696_v36 = vsub.f32 2.0, %v2694_v34  ;;  %v2693_v39 = vmul.f32 %v3150_v4, %v2682_v31 }
 0x55d   :  { %v2695_v62 = vsub.f32 2.0, %v2693_v39  ;;  %v2698_v56 = vmul.f32 %v3148_v12, %v2696_v36 }
 0x55f   :  { %v2697_v6 = vmul.f32 %v3150_v4, %v2695_v62  ;;  %v2700_v45 = vmul.f32 %v3017_v1, %v2698_v56 }
 0x561   :  { %v2699_v51 = vmul.f32 %v2697_v6, %v2607_v40 }
 0x563   :  { %3045 = vmatprep.mubr.msk.f32.mxu1 %vm4510_vm13, %v2699_v51 }
 0x564   :  { %3046 = vmatmul.mubr.msk.f32.vlgmr.msra.gmra.mxu1 %vm4511_vm4, %v2700_v45 }
 0x624   :  { %v3047_v13 = vpop.f32.mrf.mxu1 }
 0x625   :  { %v2787_v18 = vadd.f32 %v3047_v13, %v2897_v20 }
 0x626   :  { %v2781_v46 = vpop.f32.mrf.mxu1 }
 0x627   :  { %2791 = vst.msk [vmem:[#allocation14 + $0x8] sm:$0xff] %vm4512_vm7, %v2787_v18  ;;  %v2782_v47 = vadd.f32 %v2897_v20, %v2781_v46 }
 0x629   :  { %2790 = vst.msk [vmem:[#allocation14] sm:$0xff] %vm4513_vm15, %v2782_v47 }
 0x62a   :  { %3302 = shalt.err (!%p3299_p11)
}
 0x62b   :  { %2803 = dma.vmem_to_hbm [thread:$0]  %s2798_s27, 256, %s4423_s11, [#allocation4], %s3323_s22, %s3323_s22, %s3324_s23  }
 0x62c   :  { %3319 = dma.done.wait [#allocation4], 256  }
 0x62d   :  { %3320 = vsyncadd [#allocation4], 4294967040 }
 0x62e   :  { %2807 = vsyncpa [#allocation3], 1 }
 0x62f   :  { %2808 = vsyncpa [#allocation6], 1 }
 0x630   :  { %2809 = vsyncpa [#allocation9], 1 }
 0x631   :  { %2810 = vsyncpa [#allocation12], 1 }
 0x632   :  { %2811 = vsyncpa [#allocation4], 1 }

</bundles_post_ra>
